<compile_context>
chip_gen: v7x
topology: tpu7x:2x2x1
jax: 0.10.0
libtpu: 0.0.40
codegen_flags: <defaults>
</compile_context>

<pallas_src>
import functools

import jax
import jax.numpy as jnp
from jax import lax
from jax.experimental import pallas as pl
from jax.experimental.pallas import tpu as pltpu


_VMEM_LIMIT_BYTES = 48 * 1024 * 1024    # <= physical VMEM on v5e/v6e (128 MiB) and v7x (64 MiB)
_VMEM_BUDGET_BYTES = 40 * 1024 * 1024   # tile-selection budget (headroom for Mosaic temps)


def _round_up(x, m):
    return ((x + m - 1) // m) * m


def _choose_cout_tile(cout_blk, *, n_batch, p, cin, hp, wp, kh, kw):
    """Largest Cout tile whose per-grid-step working set fits the VMEM budget.

    Also forces >=2 total grid steps when batch==1 (and Cout allows it) so both
    TensorCores on dual-core parts (v7x) get work.
    """
    if cout_blk % 128 != 0:                 # small unpadded Cout: single full-dim tile
        return cout_blk

    in_bytes = 2 * hp * wp * cin * 2        # bf16 input block, double-buffered

    def fits(tc, n_tiles):
        w_bufs = 1 if n_tiles == 1 else 2   # Buffered(1) when grid-invariant
        w_bytes = w_bufs * kh * kw * cin * tc * 2
        acc_bytes = 2 * p * tc * 4          # f32 accumulator + per-tap matmul temp
        out_bytes = 2 * p * tc * 2          # bf16 output block, double-buffered
        return in_bytes + w_bytes + acc_bytes + out_bytes <= _VMEM_BUDGET_BYTES

    cands = [c for c in range(cout_blk, 127, -128) if cout_blk % c == 0]
    if n_batch == 1 and cout_blk >= 256:    # keep a parallel grid extent >= 2
        cands = [c for c in cands if c <= cout_blk // 2]
    for c in cands:
        if fits(c, cout_blk // c):
            return c
    return 128


def _conv_bn_relu_kernel(x_ref, w_ref, b_ref, o_ref, *, kh_taps, kw_taps,
                         stride, ho, wo):
    # x_ref : (1, Hp, Wp, Cin)        bf16 spatially padded NHWC input
    # w_ref : (KH, KW, Cin, TCout)    bf16 weights with BN scale folded in
    # b_ref : (1, TCout)              f32 folded bias (BN shift + conv bias)
    # o_ref : (1, Ho*Wo, TCout)       bf16 output
    cin = x_ref.shape[-1]
    tcout = o_ref.shape[-1]
    p = ho * wo

    x = x_ref[0]                                         # (Hp, Wp, Cin), one VMEM load
    acc = jnp.zeros((p, tcout), jnp.float32)
    for kh in range(kh_taps):                            # static KHxKW loop -> MXU matmuls
        for kw in range(kw_taps):
            tap = lax.slice(
                x,
                (kh, kw, 0),
                (kh + stride * (ho - 1) + 1, kw + stride * (wo - 1) + 1, cin),
                (stride, stride, 1))                     # (Ho, Wo, Cin) shifted window
            acc = acc + jnp.dot(tap.reshape(p, cin), w_ref[kh, kw],
                                preferred_element_type=jnp.float32)
    y = jnp.maximum(acc + b_ref[...], 0.0)               # bias + ReLU on the VPU (f32)
    o_ref[0] = y.astype(o_ref.dtype)                     # single cast at the store


def conv_block_forward(x_nchw, params, *, stride, padding):
    """Forward pass of conv_block (eval mode). x_nchw: (N, Cin, H, W) float32."""
    w = params["conv_w"]          # (Cout, Cin, KH, KW)  PyTorch layout
    b = params["conv_b"]          # (Cout,)
    gamma = params["bn_gamma"]    # (Cout,)
    beta = params["bn_beta"]      # (Cout,)
    mean = params["bn_mean"]      # (Cout,)
    var = params["bn_var"]        # (Cout,)
    eps = 1e-5

    N, Cin, H, W = x_nchw.shape
    Cout, _, KH, KW = w.shape

    # ---- fold BN (+ conv bias); fold the scale into the weights (tiny one-time op).
    scale = gamma * lax.rsqrt(var + eps)                     # (Cout,)
    bias = beta + (b - mean) * scale                         # (Cout,)
    w_hwio = jnp.transpose(w, (2, 3, 1, 0)) * scale[None, None, None, :]  # (KH,KW,Cin,Cout)

    # ---- NCHW -> NHWC, spatial zero-pad, bf16 (MXU-native).  No HBM im2col.
    x = jnp.transpose(x_nchw, (0, 2, 3, 1))                  # (N, H, W, Cin)
    xp = jnp.pad(x, ((0, 0), (padding, padding), (padding, padding), (0, 0)))
    xp = xp.astype(jnp.bfloat16)
    Hp, Wp = H + 2 * padding, W + 2 * padding
    Ho = (Hp - KH) // stride + 1
    Wo = (Wp - KW) // stride + 1
    P = Ho * Wo

    # ---- Cout lane padding only when cheap (<=25% overhead); otherwise keep the
    #      full (unpadded) Cout so the HBM writeback isn't inflated.
    cout128 = _round_up(Cout, 128)
    cout_blk = cout128 if cout128 * 4 <= Cout * 5 else Cout
    w_hwio = jnp.pad(w_hwio, ((0, 0), (0, 0), (0, 0), (0, cout_blk - Cout)))
    w_hwio = w_hwio.astype(jnp.bfloat16)
    bias2d = jnp.pad(bias, (0, cout_blk - Cout)).reshape(1, cout_blk).astype(jnp.float32)

    tcout = _choose_cout_tile(cout_blk, n_batch=N, p=P, cin=Cin,
                              hp=Hp, wp=Wp, kh=KH, kw=KW)
    n_cout = cout_blk // tcout
    grid = (N, n_cout)
    invariant_kwargs = dict(pipeline_mode=pl.Buffered(1)) if n_cout == 1 else {}

    kernel = functools.partial(_conv_bn_relu_kernel, kh_taps=KH, kw_taps=KW,
                               stride=stride, ho=Ho, wo=Wo)

    flops = 2 * N * P * (KH * KW * Cin) * cout_blk
    bytes_accessed = (xp.size * 2 + w_hwio.size * 2 + bias2d.size * 4
                      + N * P * cout_blk * 2)

    out = pl.pallas_call(
        kernel,
        out_shape=jax.ShapeDtypeStruct((N, P, cout_blk), jnp.bfloat16),
        grid_spec=pltpu.PrefetchScalarGridSpec(
            num_scalar_prefetch=0,
            grid=grid,
            in_specs=[
                pl.BlockSpec((1, Hp, Wp, Cin), lambda n, c: (n, 0, 0, 0)),
                pl.BlockSpec((KH, KW, Cin, tcout), lambda n, c: (0, 0, 0, c),
                             **invariant_kwargs),
                pl.BlockSpec((1, tcout), lambda n, c: (0, c),
                             **invariant_kwargs),
            ],
            out_specs=pl.BlockSpec((1, P, tcout), lambda n, c: (n, 0, c)),
        ),
        compiler_params=pltpu.CompilerParams(
            dimension_semantics=("parallel", "parallel"),
            vmem_limit_bytes=_VMEM_LIMIT_BYTES,
        ),
        cost_estimate=pl.CostEstimate(flops=flops, transcendentals=0,
                                      bytes_accessed=bytes_accessed),
    )(xp, w_hwio, bias2d)

    # Un-pad channels (if padded), back to NCHW (PyTorch convention), input dtype.
    if cout_blk != Cout:
        out = out[..., :Cout]
    out = out.reshape(N, Ho, Wo, Cout)
    return jnp.transpose(out, (0, 3, 1, 2)).astype(x_nchw.dtype)


def _reference_forward(x_nchw, params, *, stride, padding):
    """Plain-JAX f32 reference (same math, no bf16) for a correctness check."""
    w = params["conv_w"]
    b = params["conv_b"]
    eps = 1e-5
    y = lax.conv_general_dilated(
        x_nchw, w,
        window_strides=(stride, stride),
        padding=[(padding, padding), (padding, padding)],
        dimension_numbers=("NCHW", "OIHW", "NCHW"),
    ) + b.reshape(1, -1, 1, 1)
    scale = params["bn_gamma"] / jnp.sqrt(params["bn_var"] + eps)
    y = (y - params["bn_mean"].reshape(1, -1, 1, 1)) * scale.reshape(1, -1, 1, 1)
    y = y + params["bn_beta"].reshape(1, -1, 1, 1)
    return jnp.maximum(y, 0.0)


if __name__ == "__main__":
    # conv_block(in_channels=4, out_channels=8, kernel_size=3, stride=1,
    #            padding=1, dropout=0.1), eval mode.
    N, Cin, H, W = 2, 4, 16, 16
    Cout, KS, STRIDE, PAD = 8, 3, 1, 1

    key = jax.random.PRNGKey(0)
    k_x, k_w, k_b, k_g, k_be, k_m, k_v = jax.random.split(key, 7)

    x = jax.random.normal(k_x, (N, Cin, H, W), jnp.float32)
    params = {
        "conv_w": jax.random.normal(k_w, (Cout, Cin, KS, KS), jnp.float32) * 0.1,
        "conv_b": jax.random.normal(k_b, (Cout,), jnp.float32) * 0.1,
        "bn_gamma": 1.0 + 0.1 * jax.random.normal(k_g, (Cout,), jnp.float32),
        "bn_beta": 0.1 * jax.random.normal(k_be, (Cout,), jnp.float32),
        "bn_mean": 0.1 * jax.random.normal(k_m, (Cout,), jnp.float32),
        "bn_var": jnp.abs(1.0 + 0.1 * jax.random.normal(k_v, (Cout,), jnp.float32)),
    }

    out = conv_block_forward(x, params, stride=STRIDE, padding=PAD)
    out = jax.block_until_ready(out)

    ref = _reference_forward(x, params, stride=STRIDE, padding=PAD)
    assert out.shape == (N, Cout, H, W), out.shape
    # Tolerance accounts for bf16 matmul operands AND bf16 output (f32 accumulation)
    # vs the pure-f32 reference.
    assert jnp.allclose(out, ref, atol=3e-2, rtol=3e-2), "mismatch vs reference"

    print("KERNEL_OK")
</pallas_src>

<mosaic_0001>
module attributes {stable_mosaic.version = 11 : i64} {
  func.func @_conv_bn_relu_kernel(%arg0: i32, %arg1: i32, %arg2: memref<1x18x18x4xbf16, #tpu.memory_space<vmem>>, %arg3: memref<3x3x4x8xbf16, #tpu.memory_space<vmem>>, %arg4: memref<1x8xf32, #tpu.memory_space<vmem>>, %arg5: memref<1x256x8xbf16, #tpu.memory_space<vmem>>) attributes {dimension_semantics = [#tpu.dimension_semantics<parallel>, #tpu.dimension_semantics<parallel>], iteration_bounds = array<i64: 2, 1>, scalar_prefetch = 0 : i64, scratch_operands = 0 : i64, tpu.core_type = #tpu.core_type<tc>, window_params = [{transform_indices = @transform_0, window_bounds = array<i64: 1, 18, 18, 4>}, {pipeline_mode = #tpu.pipeline_mode<synchronous>, transform_indices = @transform_1, window_bounds = array<i64: 3, 3, 4, 8>}, {pipeline_mode = #tpu.pipeline_mode<synchronous>, transform_indices = @transform_2, window_bounds = array<i64: 1, 8>}, {transform_indices = @transform_3, window_bounds = array<i64: 1, 256, 8>}]} {
    %c0 = arith.constant 0 : index
    %c0_0 = arith.constant 0 : index
    %c0_1 = arith.constant 0 : index
    %c0_2 = arith.constant 0 : index
    %0 = vector.load %arg2[%c0, %c0_0, %c0_1, %c0_2] : memref<1x18x18x4xbf16, #tpu.memory_space<vmem>>, vector<1x18x18x4xbf16>
    %1 = vector.shape_cast %0 : vector<1x18x18x4xbf16> to vector<18x18x4xbf16>
    %cst = arith.constant 0.000000e+00 : f32
    %2 = vector.broadcast %cst : f32 to vector<256x8xf32>
    %3 = vector.extract_strided_slice %1 {offsets = [0, 0, 0], sizes = [16, 16, 4], strides = [1, 1, 1]} : vector<18x18x4xbf16> to vector<16x16x4xbf16>
    %4 = vector.shape_cast %3 : vector<16x16x4xbf16> to vector<256x4xbf16>
    %c0_3 = arith.constant 0 : index
    %c0_4 = arith.constant 0 : index
    %c0_5 = arith.constant 0 : index
    %c0_6 = arith.constant 0 : index
    %5 = vector.load %arg3[%c0_3, %c0_4, %c0_5, %c0_6] : memref<3x3x4x8xbf16, #tpu.memory_space<vmem>>, vector<1x1x4x8xbf16>
    %6 = vector.shape_cast %5 : vector<1x1x4x8xbf16> to vector<4x8xbf16>
    %cst_7 = arith.constant dense<0.000000e+00> : vector<256x8xf32>
    %7 = tpu.matmul %4, %6, %cst_7 {dimension_numbers = #tpu.dot_dimension_numbers<[1], [0], [0], [1], [0, 0, 1, 1], [], []>} : vector<256x4xbf16>, vector<4x8xbf16>, vector<256x8xf32> -> vector<256x8xf32>
    %8 = arith.addf %2, %7 : vector<256x8xf32>
    %9 = vector.extract_strided_slice %1 {offsets = [0, 1, 0], sizes = [16, 16, 4], strides = [1, 1, 1]} : vector<18x18x4xbf16> to vector<16x16x4xbf16>
    %10 = vector.shape_cast %9 : vector<16x16x4xbf16> to vector<256x4xbf16>
    %c0_8 = arith.constant 0 : index
    %c1 = arith.constant 1 : index
    %c0_9 = arith.constant 0 : index
    %c0_10 = arith.constant 0 : index
    %11 = vector.load %arg3[%c0_8, %c1, %c0_9, %c0_10] : memref<3x3x4x8xbf16, #tpu.memory_space<vmem>>, vector<1x1x4x8xbf16>
    %12 = vector.shape_cast %11 : vector<1x1x4x8xbf16> to vector<4x8xbf16>
    %cst_11 = arith.constant dense<0.000000e+00> : vector<256x8xf32>
    %13 = tpu.matmul %10, %12, %cst_11 {dimension_numbers = #tpu.dot_dimension_numbers<[1], [0], [0], [1], [0, 0, 1, 1], [], []>} : vector<256x4xbf16>, vector<4x8xbf16>, vector<256x8xf32> -> vector<256x8xf32>
    %14 = arith.addf %8, %13 : vector<256x8xf32>
    %15 = vector.extract_strided_slice %1 {offsets = [0, 2, 0], sizes = [16, 16, 4], strides = [1, 1, 1]} : vector<18x18x4xbf16> to vector<16x16x4xbf16>
    %16 = vector.shape_cast %15 : vector<16x16x4xbf16> to vector<256x4xbf16>
    %c0_12 = arith.constant 0 : index
    %c2 = arith.constant 2 : index
    %c0_13 = arith.constant 0 : index
    %c0_14 = arith.constant 0 : index
    %17 = vector.load %arg3[%c0_12, %c2, %c0_13, %c0_14] : memref<3x3x4x8xbf16, #tpu.memory_space<vmem>>, vector<1x1x4x8xbf16>
    %18 = vector.shape_cast %17 : vector<1x1x4x8xbf16> to vector<4x8xbf16>
    %cst_15 = arith.constant dense<0.000000e+00> : vector<256x8xf32>
    %19 = tpu.matmul %16, %18, %cst_15 {dimension_numbers = #tpu.dot_dimension_numbers<[1], [0], [0], [1], [0, 0, 1, 1], [], []>} : vector<256x4xbf16>, vector<4x8xbf16>, vector<256x8xf32> -> vector<256x8xf32>
    %20 = arith.addf %14, %19 : vector<256x8xf32>
    %21 = vector.extract_strided_slice %1 {offsets = [1, 0, 0], sizes = [16, 16, 4], strides = [1, 1, 1]} : vector<18x18x4xbf16> to vector<16x16x4xbf16>
    %22 = vector.shape_cast %21 : vector<16x16x4xbf16> to vector<256x4xbf16>
    %c1_16 = arith.constant 1 : index
    %c0_17 = arith.constant 0 : index
    %c0_18 = arith.constant 0 : index
    %c0_19 = arith.constant 0 : index
    %23 = vector.load %arg3[%c1_16, %c0_17, %c0_18, %c0_19] : memref<3x3x4x8xbf16, #tpu.memory_space<vmem>>, vector<1x1x4x8xbf16>
    %24 = vector.shape_cast %23 : vector<1x1x4x8xbf16> to vector<4x8xbf16>
    %cst_20 = arith.constant dense<0.000000e+00> : vector<256x8xf32>
    %25 = tpu.matmul %22, %24, %cst_20 {dimension_numbers = #tpu.dot_dimension_numbers<[1], [0], [0], [1], [0, 0, 1, 1], [], []>} : vector<256x4xbf16>, vector<4x8xbf16>, vector<256x8xf32> -> vector<256x8xf32>
    %26 = arith.addf %20, %25 : vector<256x8xf32>
    %27 = vector.extract_strided_slice %1 {offsets = [1, 1, 0], sizes = [16, 16, 4], strides = [1, 1, 1]} : vector<18x18x4xbf16> to vector<16x16x4xbf16>
    %28 = vector.shape_cast %27 : vector<16x16x4xbf16> to vector<256x4xbf16>
    %c1_21 = arith.constant 1 : index
    %c1_22 = arith.constant 1 : index
    %c0_23 = arith.constant 0 : index
    %c0_24 = arith.constant 0 : index
    %29 = vector.load %arg3[%c1_21, %c1_22, %c0_23, %c0_24] : memref<3x3x4x8xbf16, #tpu.memory_space<vmem>>, vector<1x1x4x8xbf16>
    %30 = vector.shape_cast %29 : vector<1x1x4x8xbf16> to vector<4x8xbf16>
    %cst_25 = arith.constant dense<0.000000e+00> : vector<256x8xf32>
    %31 = tpu.matmul %28, %30, %cst_25 {dimension_numbers = #tpu.dot_dimension_numbers<[1], [0], [0], [1], [0, 0, 1, 1], [], []>} : vector<256x4xbf16>, vector<4x8xbf16>, vector<256x8xf32> -> vector<256x8xf32>
    %32 = arith.addf %26, %31 : vector<256x8xf32>
    %33 = vector.extract_strided_slice %1 {offsets = [1, 2, 0], sizes = [16, 16, 4], strides = [1, 1, 1]} : vector<18x18x4xbf16> to vector<16x16x4xbf16>
    %34 = vector.shape_cast %33 : vector<16x16x4xbf16> to vector<256x4xbf16>
    %c1_26 = arith.constant 1 : index
    %c2_27 = arith.constant 2 : index
    %c0_28 = arith.constant 0 : index
    %c0_29 = arith.constant 0 : index
    %35 = vector.load %arg3[%c1_26, %c2_27, %c0_28, %c0_29] : memref<3x3x4x8xbf16, #tpu.memory_space<vmem>>, vector<1x1x4x8xbf16>
    %36 = vector.shape_cast %35 : vector<1x1x4x8xbf16> to vector<4x8xbf16>
    %cst_30 = arith.constant dense<0.000000e+00> : vector<256x8xf32>
    %37 = tpu.matmul %34, %36, %cst_30 {dimension_numbers = #tpu.dot_dimension_numbers<[1], [0], [0], [1], [0, 0, 1, 1], [], []>} : vector<256x4xbf16>, vector<4x8xbf16>, vector<256x8xf32> -> vector<256x8xf32>
    %38 = arith.addf %32, %37 : vector<256x8xf32>
    %39 = vector.extract_strided_slice %1 {offsets = [2, 0, 0], sizes = [16, 16, 4], strides = [1, 1, 1]} : vector<18x18x4xbf16> to vector<16x16x4xbf16>
    %40 = vector.shape_cast %39 : vector<16x16x4xbf16> to vector<256x4xbf16>
    %c2_31 = arith.constant 2 : index
    %c0_32 = arith.constant 0 : index
    %c0_33 = arith.constant 0 : index
    %c0_34 = arith.constant 0 : index
    %41 = vector.load %arg3[%c2_31, %c0_32, %c0_33, %c0_34] : memref<3x3x4x8xbf16, #tpu.memory_space<vmem>>, vector<1x1x4x8xbf16>
    %42 = vector.shape_cast %41 : vector<1x1x4x8xbf16> to vector<4x8xbf16>
    %cst_35 = arith.constant dense<0.000000e+00> : vector<256x8xf32>
    %43 = tpu.matmul %40, %42, %cst_35 {dimension_numbers = #tpu.dot_dimension_numbers<[1], [0], [0], [1], [0, 0, 1, 1], [], []>} : vector<256x4xbf16>, vector<4x8xbf16>, vector<256x8xf32> -> vector<256x8xf32>
    %44 = arith.addf %38, %43 : vector<256x8xf32>
    %45 = vector.extract_strided_slice %1 {offsets = [2, 1, 0], sizes = [16, 16, 4], strides = [1, 1, 1]} : vector<18x18x4xbf16> to vector<16x16x4xbf16>
    %46 = vector.shape_cast %45 : vector<16x16x4xbf16> to vector<256x4xbf16>
    %c2_36 = arith.constant 2 : index
    %c1_37 = arith.constant 1 : index
    %c0_38 = arith.constant 0 : index
    %c0_39 = arith.constant 0 : index
    %47 = vector.load %arg3[%c2_36, %c1_37, %c0_38, %c0_39] : memref<3x3x4x8xbf16, #tpu.memory_space<vmem>>, vector<1x1x4x8xbf16>
    %48 = vector.shape_cast %47 : vector<1x1x4x8xbf16> to vector<4x8xbf16>
    %cst_40 = arith.constant dense<0.000000e+00> : vector<256x8xf32>
    %49 = tpu.matmul %46, %48, %cst_40 {dimension_numbers = #tpu.dot_dimension_numbers<[1], [0], [0], [1], [0, 0, 1, 1], [], []>} : vector<256x4xbf16>, vector<4x8xbf16>, vector<256x8xf32> -> vector<256x8xf32>
    %50 = arith.addf %44, %49 : vector<256x8xf32>
    %51 = vector.extract_strided_slice %1 {offsets = [2, 2, 0], sizes = [16, 16, 4], strides = [1, 1, 1]} : vector<18x18x4xbf16> to vector<16x16x4xbf16>
    %52 = vector.shape_cast %51 : vector<16x16x4xbf16> to vector<256x4xbf16>
    %c2_41 = arith.constant 2 : index
    %c2_42 = arith.constant 2 : index
    %c0_43 = arith.constant 0 : index
    %c0_44 = arith.constant 0 : index
    %53 = vector.load %arg3[%c2_41, %c2_42, %c0_43, %c0_44] : memref<3x3x4x8xbf16, #tpu.memory_space<vmem>>, vector<1x1x4x8xbf16>
    %54 = vector.shape_cast %53 : vector<1x1x4x8xbf16> to vector<4x8xbf16>
    %cst_45 = arith.constant dense<0.000000e+00> : vector<256x8xf32>
    %55 = tpu.matmul %52, %54, %cst_45 {dimension_numbers = #tpu.dot_dimension_numbers<[1], [0], [0], [1], [0, 0, 1, 1], [], []>} : vector<256x4xbf16>, vector<4x8xbf16>, vector<256x8xf32> -> vector<256x8xf32>
    %56 = arith.addf %50, %55 : vector<256x8xf32>
    %c0_46 = arith.constant 0 : index
    %c0_47 = arith.constant 0 : index
    %57 = vector.load %arg4[%c0_46, %c0_47] : memref<1x8xf32, #tpu.memory_space<vmem>>, vector<1x8xf32>
    %58 = vector.broadcast %57 : vector<1x8xf32> to vector<256x8xf32>
    %59 = arith.addf %56, %58 : vector<256x8xf32>
    %cst_48 = arith.constant 0.000000e+00 : f32
    %60 = vector.broadcast %cst_48 : f32 to vector<256x8xf32>
    %61 = arith.maximumf %59, %60 : vector<256x8xf32>
    %62 = arith.truncf %61 : vector<256x8xf32> to vector<256x8xbf16>
    %c0_49 = arith.constant 0 : index
    %c0_50 = arith.constant 0 : index
    %c0_51 = arith.constant 0 : index
    %63 = vector.load %arg5[%c0_49, %c0_50, %c0_51] : memref<1x256x8xbf16, #tpu.memory_space<vmem>>, vector<1x256x8xbf16>
    %64 = vector.shape_cast %63 : vector<1x256x8xbf16> to vector<256x8xbf16>
    %65 = vector.shape_cast %62 : vector<256x8xbf16> to vector<1x256x8xbf16>
    tpu.vector_store %arg5[%c0_49, %c0_50, %c0_51], %65 {strides = array<i32>} : memref<1x256x8xbf16, #tpu.memory_space<vmem>>, vector<1x256x8xbf16>,
    return
  }
  func.func @transform_0(%arg0: i32, %arg1: i32) -> (i32, i32, i32, i32) {
    %c0_i32 = arith.constant 0 : i32
    %c0_i32_0 = arith.constant 0 : i32
    %c0_i32_1 = arith.constant 0 : i32
    %c0_i32_2 = arith.constant 0 : i32
    return %arg0, %c0_i32, %c0_i32_0, %c0_i32_1 : i32, i32, i32, i32
  }
  func.func @transform_1(%arg0: i32, %arg1: i32) -> (i32, i32, i32, i32) {
    %c0_i32 = arith.constant 0 : i32
    %c0_i32_0 = arith.constant 0 : i32
    %c0_i32_1 = arith.constant 0 : i32
    %c0_i32_2 = arith.constant 0 : i32
    return %c0_i32, %c0_i32_0, %c0_i32_1, %arg1 : i32, i32, i32, i32
  }
  func.func @transform_2(%arg0: i32, %arg1: i32) -> (i32, i32) {
    %c0_i32 = arith.constant 0 : i32
    %c0_i32_0 = arith.constant 0 : i32
    return %c0_i32, %arg1 : i32, i32
  }
  func.func @transform_3(%arg0: i32, %arg1: i32) -> (i32, i32, i32) {
    %c0_i32 = arith.constant 0 : i32
    %c0_i32_0 = arith.constant 0 : i32
    return %arg0, %c0_i32, %arg1 : i32, i32, i32
  }
}

</mosaic_0001>

<bundles_post_ra>
// kernel: tpu_custom_call.1
= control target key start
LH: loop header
LB: loop body
LE: loop exit
PB: predicated region body
PF: predicated region fallthrough
CT: control target
= control target key end

     0   :  { %s4395_s12 = smov 0   ;;  %s4397_s13 = smov 0   ;;  %s5502_s0 = inlined_call_operand.vmem [shape: bf16[2,18,18,4], index: 0, kind: input, shape index: {}]   ;;  %s5503_s1 = inlined_call_operand.vmem [shape: bf16[3,3,4,8], index: 1, kind: input, shape index: {}]   ;;  %s5504_s2 = inlined_call_operand.vmem [shape: f32[1,8], index: 2, kind: input, shape index: {}]   ;;  %s5505_s3 = inlined_call_operand.vmem [shape: bf16[2,256,8], index: 3, kind: output, shape index: {}]  }
   0x1   :  { %s4399_s14 = smov 0  }
   0x2 LB: > { %s25_s15 = sadd.s32 1, %s4369_s13  ;;  %p3281_p0 = scmp.ge.s32.totalorder %s4373_s14, 1  ;;  %s4373_s14 = sphi %s4399_s14, %s13_s14   ;;  %s4369_s13 = sphi %s4397_s13, %s5584_s13   ;;  %s4365_s12 = sphi %s4395_s12, %s5583_s12  }
   0x3   : > { %p27_p1 = scmp.ge.s32.totalorder %s25_s15, 2  ;;  %p168_p2 = scmp.lt.s32.totalorder %s4373_s14, 3 }
   0x5   : > { %s5586_s15 = smov (%p27_p1, %s25_s15), 0  ;;  %p169_p3 = pnand %p3281_p0, %p168_p2 }
   0x7   : > { %172 = sbr.rel (%p169_p3) target bundleno = 556 (0x22c), region = 32 }
   0xe   : > { %v3285_v0 = vld [vmem:[%s5503_s1 + $0x2] sm:$0x3]  ;;  %vm764_vm0 = vcmask 1041408   ;;  %v3417_v1 = vld [vmem:[%s5503_s1 + $0x8] sm:$0x3]  ;;  %p202_p4 = scmp.lt.s32.totalorder %s4365_s12, 1 }
   0xf   : > { %4294 = vmatprep.subr.msk.bf16.mxu1 %vm764_vm0, %v3285_v0  ;;  %4298 = vmatprep.subr.msk.bf16.mxu0 %vm764_vm0, %v3417_v1  ;;  %v766_v2 = vsel %vm764_vm0, %v3285_v0, 0  ;;  %v4423_v3 = vsel %vm764_vm0, %v3417_v1, 0  ;;  %v277_v4 = vld [vmem:[%s5503_s1] sm:$0x3]  ;;  %v3436_v5 = vld [vmem:[%s5503_s1 + $0xa] sm:$0x3] }
  0x10   : > { %5537 = vst [vmem:[#allocation2_spill] sm:$0xff] %v4423_v3  ;;  %3731 = vmatpush3.bf16.msra.mxu1 %v766_v2  ;;  %3867 = vmatpush3.bf16.msra.mxu0 %v4423_v3  ;;  %s5588_s12 = smov (!%p202_p4, %s4365_s12), 1  ;;  %vm278_vm1 = vsmask.f32 3328  ;;  %vm279_vm2 = vsmask.f32 7440 }
  0x11   : > { %4295 = vmatprep.subr.msk.bf16.mxu1 %vm764_vm0, %v277_v4  ;;  %4300 = vmatprep.subr.msk.bf16.mxu0 %vm764_vm0, %v3436_v5  ;;  %s4304_s24 = smul.u32 216, %s5588_s12  ;;  %v4443_v6 = vsel %vm764_vm0, %v277_v4, 0  ;;  %v4446_v7 = vsel %vm764_vm0, %v3436_v5, 0  ;;  %v4451_v8 = vld [vmem:[%s5503_s1 + $0xc] sm:$0x3]  ;;  %vm715_vm3 = vcmask 31744   ;;  %vm4487_vm4 = vmor %vm278_vm1, %vm279_vm2 }
  0x12   : > { %v4475_v20 = vsel %vm764_vm0, %v4451_v8, 0  ;;  %vm1237_vm5 = vcmask 1042432   ;;  %vm1238_vm6 = vcmask 1046532   ;;  %s3544_s19 = sshll.u32 %s5588_s12, 7  ;;  %vm3137_vm8 = vcmask 60416  }
  0x13   : > { %s4440_s27 = scalar_lea.vmem %s5502_s0, %s4304_s24  ;;  %vm4668_vm7 = vmor %vm1237_vm5, %vm1238_vm6  ;;  %s5392_s22 = scalar_lea.vmem %s5505_s3, %s3544_s19 }
  0x14   : > { %v4454_v9 = vld [vmem:[%s4440_s27] sm:$0xf]  ;;  %v4457_v10 = vld [vmem:[%s4440_s27 + $0x4] sm:$0xf]  ;;  %v225_v11 = vld [vmem:[%s4440_s27 + $0x8] sm:$0x1] }
  0x15   : > { %v282_v12 = vshrl.u32 %v4454_v9, 16  ;;  %v285_v13 = vshll.u32 %v4454_v9, 16  ;;  %v291_v14 = vshll.u32 %v4457_v10, 16  ;;  %v295_v15 = vshrl.u32 %v4457_v10, 16  ;;  %v4465_v16 = vld [vmem:[%s4440_s27 + $0xc] sm:$0xf] }
  0x16   : > { %v301_v17 = vshll.u32 %v225_v11, 16  ;;  %v4468_v18 = vld [vmem:[%s4440_s27 + $0x10] sm:$0xf]  ;;  %v4471_v19 = vld [vmem:[%s4440_s27 + $0x14] sm:$0x1]  ;;  %v306_v26 = vshrl.u32 %v4465_v16, 16 }
  0x17   : > { %v284_v21 = vrot.slane %v282_v12, 4  ;;  %v287_v22 = vrot.slane %v285_v13, 5  ;;  %v293_v23 = vrot.slane %v291_v14, 5  ;;  %v297_v24 = vrot.slane %v295_v15, 4  ;;  %v4483_v33 = vld [vmem:[%s4440_s27 + $0x18] sm:$0xf] }
  0x18   : > { %v303_v25 = vrot.slane %v301_v17, 5  ;;  %v309_v27 = vshll.u32 %v4465_v16, 16  ;;  %v315_v28 = vshll.u32 %v4468_v18, 16  ;;  %v319_v31 = vshrl.u32 %v4468_v18, 16  ;;  %v4496_v39 = vld [vmem:[%s4440_s27 + $0x1c] sm:$0xf] }
  0x19   : > { %v288_v29 = vor.u32 %v287_v22, %v284_v21  ;;  %v298_v30 = vor.u32 %v297_v24, %v293_v23  ;;  %v325_v32 = vshll.u32 %v4471_v19, 16  ;;  %v308_v35 = vrot.slane %v306_v26, 4  ;;  %v4500_v46 = vld [vmem:[%s4440_s27 + $0x20] sm:$0x1]  ;;  %v4510_v57 = vld [vmem:[%s4440_s27 + $0x24] sm:$0xf] }
  0x1a   : > { %v311_v36 = vrot.slane %v309_v27, 5  ;;  %v317_v37 = vrot.slane %v315_v28, 5  ;;  %v4493_v38 = vcombine.low %v4465_v16, %v4468_v18  ;;  %v321_v42 = vrot.slane %v319_v31, 4  ;;  %v4515_v62 = vld [vmem:[%s4440_s27 + $0x28] sm:$0xf] }
  0x1b   : > { %v289_v40 = vrot.slane %v288_v29, 4  ;;  %v299_v41 = vrot.slane %v298_v30, 4  ;;  %v327_v43 = vrot.slane %v325_v32, 5  ;;  %v1252_v45 = vrot.slane %v4471_v19, 5  ;;  %v4523_v4 = vld [vmem:[%s4440_s27 + $0x2c] sm:$0x1] }
  0x1c   : > { %v312_v44 = vor.u32 %v311_v36, %v308_v35  ;;  %v330_v47 = vshrl.u32 %v4483_v33, 16  ;;  %v333_v48 = vshll.u32 %v4483_v33, 16  ;;  %v322_v51 = vor.u32 %v321_v42, %v317_v37  ;;  %v4529_v14 = vld [vmem:[%s4440_s27 + $0x30] sm:$0xf]  ;;  %v4541_v28 = vld [vmem:[%s4440_s27 + $0x34] sm:$0xf] }
  0x1d   : > { %v294_v49 = vsel %vm4487_vm4, %v289_v40, %v293_v23  ;;  %v304_v50 = vsel %vm4487_vm4, %v299_v41, %v303_v25  ;;  %v339_v52 = vshll.u32 %v4496_v39, 16  ;;  %v343_v60 = vshrl.u32 %v4496_v39, 16  ;;  %v4536_v23 = vld [vmem:[%s5503_s1 + $0x4] sm:$0x3]  ;;  %v4548_v32 = vld [vmem:[%s4440_s27 + $0x38] sm:$0x1] }
  0x1e   : > { %v3286_v53 = vcombine.low %v294_v49, %v304_v50  ;;  %v313_v54 = vrot.slane %v312_v44, 4  ;;  %v332_v55 = vrot.slane %v330_v47, 4  ;;  %v335_v56 = vrot.slane %v333_v48, 5  ;;  %v4556_v48 = vld [vmem:[%s4440_s27 + $0x3c] sm:$0xf] }
  0x1f   : > { %v323_v58 = vrot.slane %v322_v51, 4  ;;  %v341_v59 = vrot.slane %v339_v52, 5  ;;  %v349_v61 = vshll.u32 %v4500_v46, 16  ;;  %v1256_v1 = vrot.slane %v4496_v39, 5  ;;  %v4564_v52 = vld [vmem:[%s4440_s27 + $0x40] sm:$0xf] }
  0x20   : > { %3732 = vmatprep.mubr.msk.bf16.mxu1 %vm715_vm3, %v3286_v53  ;;  %v318_v63 = vsel %vm4487_vm4, %v313_v54, %v317_v37  ;;  %v336_v0 = vor.u32 %v335_v56, %v332_v55  ;;  %v1259_v2 = vrot.slane %v4500_v46, 5  ;;  %v345_v11 = vrot.slane %v343_v60, 4 }
  0x21   : > { %v328_v5 = vsel %vm4487_vm4, %v323_v58, %v327_v43  ;;  %v351_v12 = vrot.slane %v349_v61, 5  ;;  %v354_v13 = vshrl.u32 %v4510_v57, 16  ;;  %v357_v21 = vshll.u32 %v4510_v57, 16 }
  0x22   : > { %v3287_v15 = vcombine.low %v318_v63, %v328_v5  ;;  %v337_v17 = vrot.slane %v336_v0, 4  ;;  %v363_v22 = vshll.u32 %v4515_v62, 16  ;;  %v346_v24 = vor.u32 %v345_v11, %v341_v59  ;;  %v4576_v5 = vld [vmem:[%s4440_s27 + $0x44] sm:$0x1] }
  0x23   : > { %v356_v25 = vrot.slane %v354_v13, 4  ;;  %v367_v26 = vshrl.u32 %v4515_v62, 16  ;;  %v373_v27 = vshll.u32 %v4523_v4, 16  ;;  %v359_v30 = vrot.slane %v357_v21, 5  ;;  %v4581_v13 = vld [vmem:[%s4440_s27 + $0x48] sm:$0xf] }
  0x24   : > { %3868 = vmatprep.mubr.msk.bf16.mxu0 %vm715_vm3, %v3287_v15  ;;  %3733 = vmatmul.mubr.msk.bf16.vlgmr.msra.gmra.mrb[0].mxu1 %vm715_vm3, %v3287_v15  ;;  %v342_v29 = vsel %vm4487_vm4, %v337_v17, %v341_v59  ;;  %v365_v31 = vrot.slane %v363_v22, 5  ;;  %v378_v35 = vshrl.u32 %v4529_v14, 16  ;;  %v347_v36 = vrot.slane %v346_v24, 4  ;;  %v4588_v24 = vld [vmem:[%s4440_s27 + $0x4c] sm:$0xf] }
  0x25   : > { %3765 = vmatpush3.bf16.msra.mxu1 %v4443_v6  ;;  %v369_v37 = vrot.slane %v367_v26, 4  ;;  %v375_v40 = vrot.slane %v373_v27, 5  ;;  %v381_v41 = vshll.u32 %v4529_v14, 16  ;;  %v360_v42 = vor.u32 %v359_v30, %v356_v25 }
  0x26   : > { %v380_v43 = vrot.slane %v378_v35, 4  ;;  %v387_v44 = vshll.u32 %v4541_v28, 16  ;;  %v391_v47 = vshrl.u32 %v4541_v28, 16  ;;  %4296 = vmatprep.subr.msk.bf16.mxu1 %vm764_vm0, %v4536_v23  ;;  %v352_v49 = vsel %vm4487_vm4, %v347_v36, %v351_v12 }
  0x27   : > { %v370_v6 = vor.u32 %v369_v37, %v365_v31  ;;  %v383_v50 = vrot.slane %v381_v41, 5  ;;  %v397_v51 = vshll.u32 %v4548_v32, 16  ;;  %v4566_v53 = vcombine.low %v342_v29, %v352_v49 }
  0x28   : > { %v361_v54 = vrot.slane %v360_v42, 4  ;;  %v389_v55 = vrot.slane %v387_v44, 5  ;;  %v393_v56 = vrot.slane %v391_v47, 4  ;;  %v402_v61 = vshrl.u32 %v4556_v48, 16  ;;  %v4610_v42 = vld [vmem:[%s4440_s27 + $0x54] sm:$0xf] }
  0x29   : > { %5540 = vst [vmem:[#allocation3_spill] sm:$0xff] %v4566_v53  ;;  %v371_v58 = vrot.slane %v370_v6, 4  ;;  %v384_v59 = vor.u32 %v383_v50, %v380_v43  ;;  %v399_v60 = vrot.slane %v397_v51, 5  ;;  %3869 = vmatmul.mubr.msk.bf16.vlgmr.msra.gmra.mrb[0].mxu0 %vm715_vm3, %v4566_v53  ;;  %3736 = vmatprep.mubr.msk.bf16.mxu1 %vm715_vm3, %v4566_v53  ;;  %v405_v11 = vshll.u32 %v4556_v48, 16  ;;  %5542 = vst [vmem:[#allocation5_spill] sm:$0xff] %v4610_v42 }
  0x2a   : > { %v366_v63 = vsel %vm4487_vm4, %v361_v54, %v365_v31  ;;  %v394_v0 = vor.u32 %v393_v56, %v389_v55  ;;  %v411_v12 = vshll.u32 %v4564_v52, 16  ;;  %3901 = vmatpush3.bf16.msra.mxu0 %v4446_v7  ;;  %v404_v21 = vrot.slane %v402_v61, 4  ;;  %v4615_v6 = vld [vmem:[%s4440_s27 + $0x58] sm:$0xf] }
  0x2b   : > { %v376_v15 = vsel %vm4487_vm4, %v371_v58, %v375_v40  ;;  %v385_v17 = vrot.slane %v384_v59, 4  ;;  %v415_v22 = vshrl.u32 %v4564_v52, 16  ;;  %v407_v27 = vrot.slane %v405_v11, 5  ;;  %4301 = vmatprep.subr.msk.bf16.mxu0 %vm764_vm0, %v4451_v8  ;;  %v4605_v8 = vld [vmem:[%s4440_s27 + $0x50] sm:$0x1] }
  0x2c   : > { %v4590_v25 = vcombine.low %v366_v63, %v376_v15  ;;  %v395_v26 = vrot.slane %v394_v0, 4  ;;  %v413_v29 = vrot.slane %v411_v12, 5  ;;  %v421_v31 = vshll.u32 %v4576_v5, 16  ;;  %v4628_v11 = vld [vmem:[%s4440_s27 + $0x5c] sm:$0x1] }
  0x2d   : > { %v390_v7 = vsel %vm4487_vm4, %v385_v17, %v389_v55  ;;  %v417_v30 = vrot.slane %v415_v22, 4  ;;  %v426_v35 = vshrl.u32 %v4581_v13, 16  ;;  %v408_v37 = vor.u32 %v407_v27, %v404_v21  ;;  %v4632_v15 = vld [vmem:[%s4440_s27 + $0x60] sm:$0xf]  ;;  %v4637_v27 = vld [vmem:[%s4440_s27 + $0x64] sm:$0xf] }
  0x2e   : > { %5541 = vst [vmem:[#allocation4_spill] sm:$0xff] %v4590_v25  ;;  %3872 = vmatprep.mubr.msk.bf16.mxu0 %vm715_vm3, %v4590_v25  ;;  %3737 = vmatmul.mubr.msk.bf16.gmra.mrb[4].mxu1 %vm715_vm3, %v4590_v25  ;;  %v400_v36 = vsel %vm4487_vm4, %v395_v26, %v399_v60  ;;  %v429_v40 = vshll.u32 %v4581_v13, 16  ;;  %v435_v41 = vshll.u32 %v4588_v24, 16  ;;  %v423_v47 = vrot.slane %v421_v31, 5  ;;  %v4849_v25 = vld [vmem:[%s4440_s27 + $0xa8] sm:$0xf] }
  0x2f   : > { %v4612_v43 = vcombine.low %v390_v7, %v400_v36  ;;  %v418_v44 = vor.u32 %v417_v30, %v413_v29  ;;  %v428_v49 = vrot.slane %v426_v35, 4  ;;  %v409_v50 = vrot.slane %v408_v37, 4 }
  0x30   : > { %v431_v51 = vrot.slane %v429_v40, 5  ;;  %v437_v54 = vrot.slane %v435_v41, 5  ;;  %v439_v55 = vshrl.u32 %v4588_v24, 16  ;;  %v445_v58 = vshll.u32 %v4605_v8, 16 }
  0x31   : > { %5543 = vst [vmem:[#allocation6_spill] sm:$0xff] %v4612_v43  ;;  %3740 = vmatprep.mubr.msk.bf16.mxu1 %vm715_vm3, %v4612_v43  ;;  %v419_v56 = vrot.slane %v418_v44, 4  ;;  %v450_v59 = vshrl.u32 %v4610_v42, 16  ;;  %v453_v60 = vshll.u32 %v4610_v42, 16  ;;  %3873 = vmatmul.mubr.msk.bf16.gmra.mrb[4].mxu0 %vm715_vm3, %v4612_v43  ;;  %v414_v61 = vsel %vm4487_vm4, %v409_v50, %v413_v29 }
  0x32   : > { %v432_v63 = vor.u32 %v431_v51, %v428_v49  ;;  %v441_v0 = vrot.slane %v439_v55, 4  ;;  %v459_v12 = vshll.u32 %v4615_v6, 16  ;;  %v447_v21 = vrot.slane %v445_v58, 5 }
  0x33   : > { %v424_v17 = vsel %vm4487_vm4, %v419_v56, %v423_v47  ;;  %v452_v22 = vrot.slane %v450_v59, 4  ;;  %v455_v26 = vrot.slane %v453_v60, 5  ;;  %v463_v36 = vshrl.u32 %v4615_v6, 16  ;;  %v4651_v47 = vld [vmem:[%s4440_s27 + $0x68] sm:$0x1] }
  0x34   : > { %v4639_v7 = vcombine.low %v414_v61, %v424_v17  ;;  %v433_v29 = vrot.slane %v432_v63, 4  ;;  %v442_v30 = vor.u32 %v441_v0, %v437_v54  ;;  %v461_v31 = vrot.slane %v459_v12, 5 }
  0x35   : > { %v456_v35 = vor.u32 %v455_v26, %v452_v22  ;;  %v469_v37 = vshll.u32 %v4628_v11, 16  ;;  %v474_v40 = vshrl.u32 %v4632_v15, 16  ;;  %v477_v49 = vshll.u32 %v4632_v15, 16 }
  0x36   : > { %5544 = vst [vmem:[#allocation7_spill] sm:$0xff] %v4639_v7  ;;  %3876 = vmatprep.mubr.msk.bf16.mxu0 %vm715_vm3, %v4639_v7  ;;  %3741 = vmatmul.mubr.msk.bf16.gmra.mrb[8].mxu1 %vm715_vm3, %v4639_v7  ;;  %v438_v41 = vsel %vm4487_vm4, %v433_v29, %v437_v54  ;;  %v443_v44 = vrot.slane %v442_v30, 4  ;;  %v483_v50 = vshll.u32 %v4637_v27, 16  ;;  %v465_v55 = vrot.slane %v463_v36, 4  ;;  %v4659_v54 = vld [vmem:[%s4440_s27 + $0x6c] sm:$0xf] }
  0x37   : > { %v457_v51 = vrot.slane %v456_v35, 4  ;;  %v471_v56 = vrot.slane %v469_v37, 5  ;;  %v476_v58 = vrot.slane %v474_v40, 4  ;;  %v479_v60 = vrot.slane %v477_v49, 5  ;;  %v4675_v36 = vld [vmem:[%s4440_s27 + $0x70] sm:$0xf] }
  0x38   : > { %v448_v59 = vsel %vm4487_vm4, %v443_v44, %v447_v21  ;;  %v485_v61 = vrot.slane %v483_v50, 5  ;;  %v487_v63 = vshrl.u32 %v4637_v27, 16  ;;  %v466_v17 = vor.u32 %v465_v55, %v461_v31  ;;  %v4826_v7 = vld [vmem:[%s4440_s27 + $0xa0] sm:$0xf] }
  0x39   : > { %v4661_v0 = vcombine.low %v438_v41, %v448_v59  ;;  %v462_v12 = vsel %vm4487_vm4, %v457_v51, %v461_v31  ;;  %v493_v22 = vshll.u32 %v4651_v47, 16  ;;  %v480_v21 = vor.u32 %v479_v60, %v476_v58  ;;  %v4688_v51 = vld [vmem:[%s4440_s27 + $0x74] sm:$0x1] }
  0x3a   : > { %v489_v29 = vrot.slane %v487_v63, 4  ;;  %v3351_v30 = vrot.slane %v4465_v16, 9  ;;  %v1249_v35 = vrot.slane %v4468_v18, 5  ;;  %v467_v31 = vrot.slane %v466_v17, 4 }
  0x3b   : > { %5545 = vst [vmem:[#allocation8_spill] sm:$0xff] %v4661_v0  ;;  %3877 = vmatmul.mubr.msk.bf16.gmra.mrb[8].mxu0 %vm715_vm3, %v4661_v0  ;;  %3744 = vmatprep.mubr.msk.bf16.mxu1 %vm715_vm3, %v4661_v0  ;;  %v495_v37 = vrot.slane %v493_v22, 5  ;;  %v498_v40 = vshrl.u32 %v4659_v54, 16  ;;  %v501_v41 = vshll.u32 %v4659_v54, 16  ;;  %v481_v44 = vrot.slane %v480_v21, 4 }
  0x3c   : > { %v490_v49 = vor.u32 %v489_v29, %v485_v61  ;;  %v1250_v16 = vsel %vm4668_vm7, %v3351_v30, %v1249_v35  ;;  %v1251_v18 = vrot.slane %v1249_v35, 4  ;;  %v472_v50 = vsel %vm4487_vm4, %v467_v31, %v471_v56  ;;  %v4700_v56 = vld [vmem:[%s4440_s27 + $0x78] sm:$0xf]  ;;  %v4716_v31 = vld [vmem:[%s4440_s27 + $0x7c] sm:$0xf] }
  0x3d   : > { %v500_v55 = vrot.slane %v498_v40, 4  ;;  %v503_v58 = vrot.slane %v501_v41, 5  ;;  %v507_v59 = vshll.u32 %v4675_v36, 16  ;;  %v4691_v60 = vcombine.low %v462_v12, %v472_v50 }
  0x3e   : > { %v486_v63 = vsel %vm4487_vm4, %v481_v44, %v485_v61  ;;  %v491_v17 = vrot.slane %v490_v49, 4  ;;  %v1253_v22 = vsel %vm4668_vm7, %v1251_v18, %v1252_v45  ;;  %v511_v35 = vshrl.u32 %v4675_v36, 16  ;;  %v4721_v49 = vld [vmem:[%s4440_s27 + $0x80] sm:$0x1] }
  0x3f   : > { %5548 = vst [vmem:[#allocation9_spill] sm:$0xff] %v4691_v60  ;;  %v4702_v21 = vcombine.low %v1250_v16, %v1253_v22  ;;  %v504_v29 = vor.u32 %v503_v58, %v500_v55  ;;  %v509_v30 = vrot.slane %v507_v59, 5  ;;  %3880 = vmatprep.mubr.msk.bf16.mxu0 %vm715_vm3, %v4691_v60  ;;  %3745 = vmatmul.mubr.msk.bf16.gmra.mrb[12].mxu1 %vm715_vm3, %v4691_v60  ;;  %v517_v45 = vshll.u32 %v4688_v51, 16  ;;  %v4819_v60 = vld [vmem:[%s4440_s27 + $0x9c] sm:$0xf] }
  0x40   : > { %v496_v19 = vsel %vm4487_vm4, %v491_v17, %v495_v37  ;;  %v3352_v61 = vrot.slane %v4483_v33, 9  ;;  %v1258_v12 = vrot.slane %v1256_v1, 4  ;;  %v513_v44 = vrot.slane %v511_v35, 4 }
  0x41   : > { %5549 = vst [vmem:[#allocation10_spill] sm:$0xff] %v4702_v21  ;;  %v4718_v40 = vcombine.low %v486_v63, %v496_v19  ;;  %v505_v41 = vrot.slane %v504_v29, 4  ;;  %v522_v16 = vshrl.u32 %v4700_v56, 16  ;;  %v519_v18 = vrot.slane %v517_v45, 5  ;;  %v4747_v29 = vld [vmem:[%s4440_s27 + $0x84] sm:$0xf] }
  0x42   : > { %v1257_v37 = vsel %vm4668_vm7, %v3352_v61, %v1256_v1  ;;  %v1260_v50 = vsel %vm4668_vm7, %v1258_v12, %v1259_v2  ;;  %v525_v55 = vshll.u32 %v4700_v56, 16  ;;  %v514_v59 = vor.u32 %v513_v44, %v509_v30 }
  0x43   : > { %5550 = vst [vmem:[#allocation11_spill] sm:$0xff] %v4718_v40  ;;  %3881 = vmatmul.mubr.msk.bf16.gmra.mrb[12].mxu0 %vm715_vm3, %v4718_v40  ;;  %3748 = vmatprep.mubr.msk.bf16.mxu1 %vm715_vm3, %v4718_v40  ;;  %v510_v58 = vsel %vm4487_vm4, %v505_v41, %v509_v30  ;;  %v4739_v63 = vcombine.low %v1257_v37, %v1260_v50  ;;  %v524_v1 = vrot.slane %v522_v16, 4  ;;  %v531_v2 = vshll.u32 %v4716_v31, 16  ;;  %v4753_v16 = vld [vmem:[%s4440_s27 + $0x88] sm:$0xf] }
  0x44   : > { %3902 = vmatprep.mubr.msk.bf16.mxu0 %vm715_vm3, %v4702_v21  ;;  %v527_v46 = vrot.slane %v525_v55, 5  ;;  %v535_v17 = vshrl.u32 %v4716_v31, 16  ;;  %v541_v22 = vshll.u32 %v4721_v49, 16  ;;  %v515_v35 = vrot.slane %v514_v59, 4 }
  0x45   : > { %5551 = vst [vmem:[#allocation12_spill] sm:$0xff] %v4739_v63  ;;  %v3353_v30 = vrot.slane %v4510_v57, 9  ;;  %v1263_v19 = vrot.slane %v4515_v62, 5  ;;  %v1266_v45 = vrot.slane %v4523_v4, 5  ;;  %v533_v12 = vrot.slane %v531_v2, 5 }
  0x46   : > { %v528_v61 = vor.u32 %v527_v46, %v524_v1  ;;  %v537_v41 = vrot.slane %v535_v17, 4  ;;  %v543_v44 = vrot.slane %v541_v22, 5  ;;  %v520_v37 = vsel %vm4487_vm4, %v515_v35, %v519_v18  ;;  %v4763_v1 = vld [vmem:[%s4440_s27 + $0x8c] sm:$0x1] }
  0x47   : > { %v1264_v50 = vsel %vm4668_vm7, %v3353_v30, %v1263_v19  ;;  %v1265_v55 = vrot.slane %v1263_v19, 4  ;;  %v546_v59 = vshrl.u32 %v4747_v29, 16  ;;  %v4760_v3 = vcombine.low %v510_v58, %v520_v37 }
  0x48   : > { %v529_v40 = vrot.slane %v528_v61, 4  ;;  %v538_v4 = vor.u32 %v537_v41, %v533_v12  ;;  %v549_v46 = vshll.u32 %v4747_v29, 16  ;;  %v555_v18 = vshll.u32 %v4753_v16, 16  ;;  %v4777_v61 = vld [vmem:[%s4440_s27 + $0x90] sm:$0xf] }
  0x49   : > { %5552 = vst [vmem:[#allocation13_spill] sm:$0xff] %v4760_v3  ;;  %v1267_v2 = vsel %vm4668_vm7, %v1265_v55, %v1266_v45  ;;  %v548_v17 = vrot.slane %v546_v59, 4  ;;  %v559_v22 = vshrl.u32 %v4753_v16, 16  ;;  %3749 = vmatmul.mubr.msk.bf16.gmra.mrb[16].mxu1 %vm715_vm3, %v4760_v3  ;;  %v4782_v45 = vld [vmem:[%s5503_s1 + $0xe] sm:$0x3]  ;;  %v1270_v59 = vrot.slane %v4541_v28, 5 }
  0x4a   : > { %v534_v58 = vsel %vm4487_vm4, %v529_v40, %v533_v12  ;;  %v539_v35 = vrot.slane %v538_v4, 4  ;;  %v4774_v30 = vcombine.low %v1264_v50, %v1267_v2  ;;  %v551_v19 = vrot.slane %v549_v46, 5  ;;  %5554 = vst [vmem:[#allocation15_spill] sm:$0xff] %v4782_v45  ;;  %v4796_v46 = vld [vmem:[%s4440_s27 + $0x94] sm:$0xf] }
  0x4b   : > { %3903 = vmatmul.mubr.msk.bf16.vlgmr.msra.gmra.mrb[0].mxu0 %vm715_vm3, %v4739_v63  ;;  %v557_v41 = vrot.slane %v555_v18, 5  ;;  %v561_v37 = vrot.slane %v559_v22, 4  ;;  %v565_v40 = vshll.u32 %v4763_v1, 16  ;;  %v3354_v12 = vrot.slane %v4529_v14, 9  ;;  %v4801_v3 = vld [vmem:[%s4440_s27 + $0x98] sm:$0x1] }
  0x4c   : > { %5553 = vst [vmem:[#allocation14_spill] sm:$0xff] %v4774_v30  ;;  %3935 = vmatpush3.bf16.msra.mxu0 %v4475_v20  ;;  %v544_v50 = vsel %vm4487_vm4, %v539_v35, %v543_v44  ;;  %3906 = vmatprep.mubr.msk.bf16.mxu0 %vm715_vm3, %v4774_v30  ;;  %v552_v55 = vor.u32 %v551_v19, %v548_v17  ;;  %v1273_v4 = vrot.slane %v4548_v32, 5  ;;  %v570_v20 = vshrl.u32 %v4777_v61, 16 }
  0x4d   : > { %v4798_v2 = vcombine.low %v534_v58, %v544_v50  ;;  %v562_v18 = vor.u32 %v561_v37, %v557_v41  ;;  %v567_v22 = vrot.slane %v565_v40, 5  ;;  %4302 = vmatprep.subr.msk.bf16.mxu0 %vm764_vm0, %v4782_v45  ;;  %v1271_v17 = vsel %vm4668_vm7, %v3354_v12, %v1270_v59 }
  0x4e   : > { %v553_v44 = vrot.slane %v552_v55, 4  ;;  %v1272_v35 = vrot.slane %v1270_v59, 4  ;;  %v573_v32 = vshll.u32 %v4777_v61, 16  ;;  %v572_v19 = vrot.slane %v570_v20, 4 }
  0x4f   : > { %5555 = vst [vmem:[#allocation16_spill] sm:$0xff] %v4798_v2  ;;  %3752 = vmatprep.mubr.msk.bf16.mxu1 %vm715_vm3, %v4798_v2  ;;  %v563_v58 = vrot.slane %v562_v18, 4  ;;  %v579_v37 = vshll.u32 %v4796_v46, 16  ;;  %v583_v40 = vshrl.u32 %v4796_v46, 16  ;;  %v589_v59 = vshll.u32 %v4801_v3, 16 }
  0x50   : > { %v558_v50 = vsel %vm4487_vm4, %v553_v44, %v557_v41  ;;  %v1274_v55 = vsel %vm4668_vm7, %v1272_v35, %v1273_v4  ;;  %v575_v12 = vrot.slane %v573_v32, 5  ;;  %v3355_v4 = vrot.slane %v4556_v48, 9 }
  0x51   : > { %v568_v2 = vsel %vm4487_vm4, %v563_v58, %v567_v22  ;;  %v4823_v18 = vcombine.low %v1271_v17, %v1274_v55  ;;  %v581_v20 = vrot.slane %v579_v37, 5  ;;  %v585_v0 = vrot.slane %v583_v40, 4  ;;  %v4839_v58 = vld [vmem:[%s4440_s27 + $0xa4] sm:$0x1] }
  0x52   : > { %v4828_v43 = vcombine.low %v558_v50, %v568_v2  ;;  %v576_v41 = vor.u32 %v575_v12, %v572_v19  ;;  %v591_v44 = vrot.slane %v589_v59, 5  ;;  %v1277_v32 = vrot.slane %v4564_v52, 5 }
  0x53   : > { %5556 = vst [vmem:[#allocation17_spill] sm:$0xff] %v4823_v18  ;;  %3907 = vmatmul.mubr.msk.bf16.gmra.mrb[4].mxu0 %vm715_vm3, %v4823_v18  ;;  %v586_v35 = vor.u32 %v585_v0, %v581_v20  ;;  %v1280_v22 = vrot.slane %v4576_v5, 5  ;;  %v594_v17 = vshrl.u32 %v4819_v60, 16  ;;  %v597_v19 = vshll.u32 %v4819_v60, 16 }
  0x54   : > { %5557 = vst [vmem:[#allocation18_spill] sm:$0xff] %v4828_v43  ;;  %3753 = vmatmul.mubr.msk.bf16.gmra.mrb[20].mxu1 %vm715_vm3, %v4828_v43  ;;  %v577_v2 = vrot.slane %v576_v41, 4  ;;  %v603_v37 = vshll.u32 %v4826_v7, 16  ;;  %v607_v0 = vshrl.u32 %v4826_v7, 16  ;;  %v1278_v5 = vsel %vm4668_vm7, %v3355_v4, %v1277_v32 }
  0x55   : > { %v587_v40 = vrot.slane %v586_v35, 4  ;;  %v1279_v50 = vrot.slane %v1277_v32, 4  ;;  %v596_v55 = vrot.slane %v594_v17, 4  ;;  %v599_v59 = vrot.slane %v597_v19, 5  ;;  %v4858_v32 = vld [vmem:[%s4440_s27 + $0xac] sm:$0xf] }
  0x56   : > { %v582_v12 = vsel %vm4487_vm4, %v577_v2, %v581_v20  ;;  %v605_v41 = vrot.slane %v603_v37, 5  ;;  %v609_v43 = vrot.slane %v607_v0, 4  ;;  %v613_v35 = vshll.u32 %v4839_v58, 16 }
  0x57   : > { %v592_v53 = vsel %vm4487_vm4, %v587_v40, %v591_v44  ;;  %v1281_v18 = vsel %vm4668_vm7, %v1279_v50, %v1280_v22  ;;  %v3356_v4 = vrot.slane %v4581_v13, 9  ;;  %v600_v2 = vor.u32 %v599_v59, %v596_v55 }
  0x58   : > { %v4860_v17 = vcombine.low %v582_v12, %v592_v53  ;;  %v4862_v20 = vcombine.low %v1278_v5, %v1281_v18  ;;  %v610_v19 = vor.u32 %v609_v43, %v605_v41  ;;  %v615_v37 = vrot.slane %v613_v35, 5  ;;  %v4872_v18 = vld [vmem:[%s4440_s27 + $0xb0] sm:$0x1] }
  0x59   : > { %v1284_v0 = vrot.slane %v4588_v24, 5  ;;  %v1287_v44 = vrot.slane %v4605_v8, 5  ;;  %v618_v22 = vshrl.u32 %v4849_v25, 16  ;;  %v601_v53 = vrot.slane %v600_v2, 4 }
  0x5a   : > { %5558 = vst [vmem:[#allocation19_spill] sm:$0xff] %v4860_v17  ;;  %5559 = vst [vmem:[#allocation20_spill] sm:$0xff] %v4862_v20  ;;  %3756 = vmatprep.mubr.msk.bf16.mxu1 %vm715_vm3, %v4860_v17  ;;  %3910 = vmatprep.mubr.msk.bf16.mxu0 %vm715_vm3, %v4862_v20  ;;  %v611_v40 = vrot.slane %v610_v19, 4  ;;  %v621_v43 = vshll.u32 %v4849_v25, 16  ;;  %v627_v5 = vshll.u32 %v4858_v32, 16  ;;  %v631_v12 = vshrl.u32 %v4858_v32, 16 }
  0x5b   : > { %v1285_v8 = vsel %vm4668_vm7, %v3356_v4, %v1284_v0  ;;  %v1286_v50 = vrot.slane %v1284_v0, 4  ;;  %v620_v55 = vrot.slane %v618_v22, 4  ;;  %v606_v59 = vsel %vm4487_vm4, %v601_v53, %v605_v41  ;;  %v4884_v17 = vld [vmem:[%s4440_s27 + $0xb4] sm:$0xf]  ;;  %v4896_v53 = vld [vmem:[%s4440_s27 + $0xb8] sm:$0xf] }
  0x5c   : > { %v616_v35 = vsel %vm4487_vm4, %v611_v40, %v615_v37  ;;  %v623_v2 = vrot.slane %v621_v43, 5  ;;  %v629_v19 = vrot.slane %v627_v5, 5  ;;  %v633_v0 = vrot.slane %v631_v12, 4 }
  0x5d   : > { %v4886_v20 = vcombine.low %v606_v59, %v616_v35  ;;  %v1288_v4 = vsel %vm4668_vm7, %v1286_v50, %v1287_v44  ;;  %v637_v22 = vshll.u32 %v4872_v18, 16  ;;  %v3357_v41 = vrot.slane %v4610_v42, 9  ;;  %v4902_v44 = vld [vmem:[%s4440_s27 + $0xbc] sm:$0x1] }
  0x5e   : > { %v4891_v30 = vcombine.low %v1285_v8, %v1288_v4  ;;  %v624_v63 = vor.u32 %v623_v2, %v620_v55  ;;  %v1291_v37 = vrot.slane %v4615_v6, 5  ;;  %v634_v40 = vor.u32 %v633_v0, %v629_v19 }
  0x5f   : > { %5560 = vst [vmem:[#allocation21_spill] sm:$0xff] %v4886_v20  ;;  %3757 = vmatmul.mubr.msk.bf16.gmra.mrb[24].mxu1 %vm715_vm3, %v4886_v20  ;;  %v639_v43 = vrot.slane %v637_v22, 5  ;;  %v1294_v5 = vrot.slane %v4628_v11, 5  ;;  %v642_v50 = vshrl.u32 %v4884_v17, 16  ;;  %v645_v59 = vshll.u32 %v4884_v17, 16 }
  0x60   : > { %5561 = vst [vmem:[#allocation22_spill] sm:$0xff] %v4891_v30  ;;  %3911 = vmatmul.mubr.msk.bf16.gmra.mrb[8].mxu0 %vm715_vm3, %v4891_v30  ;;  %v625_v8 = vrot.slane %v624_v63, 4  ;;  %v1292_v55 = vsel %vm4668_vm7, %v3357_v41, %v1291_v37  ;;  %v1293_v12 = vrot.slane %v1291_v37, 4  ;;  %v635_v35 = vrot.slane %v634_v40, 4 }
  0x61   : > { %v644_v2 = vrot.slane %v642_v50, 4  ;;  %v651_v4 = vshll.u32 %v4896_v53, 16  ;;  %v655_v11 = vshrl.u32 %v4896_v53, 16  ;;  %v647_v20 = vrot.slane %v645_v59, 5 }
  0x62   : > { %v630_v0 = vsel %vm4487_vm4, %v625_v8, %v629_v19  ;;  %v1295_v22 = vsel %vm4668_vm7, %v1293_v12, %v1294_v5  ;;  %v661_v63 = vshll.u32 %v4902_v44, 16  ;;  %v640_v41 = vsel %vm4487_vm4, %v635_v35, %v639_v43 }
  0x63   : > { %v4919_v37 = vcombine.low %v1292_v55, %v1295_v22  ;;  %v653_v40 = vrot.slane %v651_v4, 5  ;;  %v657_v50 = vrot.slane %v655_v11, 4  ;;  %v4921_v30 = vcombine.low %v630_v0, %v640_v41 }
  0x64   : > { %v648_v21 = vor.u32 %v647_v20, %v644_v2  ;;  %v663_v45 = vrot.slane %v661_v63, 5  ;;  %v3358_v42 = vrot.slane %v4632_v15, 9  ;;  %v1298_v5 = vrot.slane %v4637_v27, 5 }
  0x65   : > { %3914 = vmatprep.mubr.msk.bf16.mxu0 %vm715_vm3, %v4919_v37  ;;  %v658_v19 = vor.u32 %v657_v50, %v653_v40  ;;  %v1301_v8 = vrot.slane %v4651_v47, 5  ;;  %v3359_v43 = vrot.slane %v4659_v54, 9  ;;  %3760 = vmatprep.mubr.msk.bf16.mxu1 %vm715_vm3, %v4921_v30  ;;  %v3318_v20 = vcombine.low %v4454_v9, %v4457_v10 }
  0x66   : > { %v649_v55 = vrot.slane %v648_v21, 4  ;;  %v1305_v12 = vrot.slane %v4675_v36, 5  ;;  %v1308_v59 = vrot.slane %v4688_v51, 5  ;;  %v1299_v2 = vsel %vm4668_vm7, %v3358_v42, %v1298_v5 }
  0x67   : > { %v659_v35 = vrot.slane %v658_v19, 4  ;;  %v1300_v4 = vrot.slane %v1298_v5, 4  ;;  %v1312_v47 = vrot.slane %v4716_v31, 5  ;;  %v3360_v9 = vrot.slane %v4700_v56, 9 }
  0x68   : > { %v654_v11 = vsel %vm4487_vm4, %v649_v55, %v653_v40  ;;  %v1306_v21 = vsel %vm4668_vm7, %v3359_v43, %v1305_v12  ;;  %v1307_v0 = vrot.slane %v1305_v12, 4  ;;  %v1315_v42 = vrot.slane %v4721_v49, 5 }
  0x69   : > { %v664_v10 = vsel %vm4487_vm4, %v659_v35, %v663_v45  ;;  %v1302_v51 = vsel %vm4668_vm7, %v1300_v4, %v1301_v8  ;;  %v1314_v22 = vrot.slane %v1312_v47, 4  ;;  %v3361_v19 = vrot.slane %v4747_v29, 9 }
  0x6a   : > { %v4948_v63 = vcombine.low %v654_v11, %v664_v10  ;;  %v4950_v41 = vcombine.low %v1299_v2, %v1302_v51  ;;  %v1309_v40 = vsel %vm4668_vm7, %v1307_v0, %v1308_v59  ;;  %v1319_v5 = vrot.slane %v4753_v16, 5 }
  0x6b   : > { %v4954_v50 = vcombine.low %v1306_v21, %v1309_v40  ;;  %v1322_v49 = vrot.slane %v4763_v1, 5  ;;  %v1313_v45 = vsel %vm4668_vm7, %v3360_v9, %v1312_v47  ;;  %v1316_v8 = vsel %vm4668_vm7, %v1314_v22, %v1315_v42 }
  0x6c   : > { %3761 = vmatmul.mubr.msk.bf16.gmra.mrb[28].mxu1 %vm715_vm3, %v4948_v63  ;;  %3915 = vmatmul.mubr.msk.bf16.gmra.mrb[12].mxu0 %vm715_vm3, %v4950_v41  ;;  %v1321_v43 = vrot.slane %v1319_v5, 4  ;;  %v1326_v55 = vrot.slane %v4796_v46, 5  ;;  %v1333_v12 = vrot.slane %v4826_v7, 5  ;;  %v1320_v59 = vsel %vm4668_vm7, %v3361_v19, %v1319_v5 }
  0x6d   : > { %3766 = vmatprep.mubr.msk.bf16.mxu1 %vm715_vm3, %v3318_v20  ;;  %3918 = vmatprep.mubr.msk.bf16.mxu0 %vm715_vm3, %v4954_v50  ;;  %v4976_v20 = vcombine.low %v1313_v45, %v1316_v8  ;;  %v3362_v35 = vrot.slane %v4777_v61, 9  ;;  %v1329_v4 = vrot.slane %v4801_v3, 5  ;;  %v4982_v47 = vcombine.low %v4483_v33, %v4496_v39  ;;  %v4994_v3 = vld [vmem:[%s5503_s1 + $0x6] sm:$0x3] }
  0x6e   : > { %v1323_v1 = vsel %vm4668_vm7, %v1321_v43, %v1322_v49  ;;  %v1328_v2 = vrot.slane %v1326_v55, 4  ;;  %v3363_v11 = vrot.slane %v4819_v60, 9  ;;  %v1451_v21 = vsel %vm764_vm0, %v4536_v23, 0 }
  0x6f   : > { %v4987_v0 = vcombine.low %v1320_v59, %v1323_v1  ;;  %v1335_v9 = vrot.slane %v1333_v12, 4  ;;  %v1336_v10 = vrot.slane %v4839_v58, 5  ;;  %v1340_v51 = vrot.slane %v4858_v32, 5 }
  0x70   : > { %v1327_v33 = vsel %vm4668_vm7, %v3362_v35, %v1326_v55  ;;  %v1330_v39 = vsel %vm4668_vm7, %v1328_v2, %v1329_v4  ;;  %v5008_v23 = vcombine.low %v4510_v57, %v4515_v62  ;;  %v1334_v58 = vsel %vm4668_vm7, %v3363_v11, %v1333_v12 }
  0x71   : > { %v5014_v22 = vcombine.low %v4632_v15, %v4637_v27  ;;  %v1337_v42 = vsel %vm4668_vm7, %v1335_v9, %v1336_v10  ;;  %v3364_v40 = vrot.slane %v4849_v25, 9  ;;  %v1347_v19 = vrot.slane %v4896_v53, 5 }
  0x72   : > { %v5024_v57 = vcombine.low %v4659_v54, %v4675_v36  ;;  %v5028_v62 = vcombine.low %v1327_v33, %v1330_v39  ;;  %v1342_v15 = vrot.slane %v1340_v51, 4  ;;  %v1343_v27 = vrot.slane %v4872_v18, 5  ;;  %v273_v18 = vld [vmem:[%s4440_s27 + $0xc8] sm:$0x1] }
  0x73   : > { %v5033_v5 = vcombine.low %v4700_v56, %v4716_v31  ;;  %v5037_v49 = vcombine.low %v4747_v29, %v4753_v16  ;;  %v5041_v54 = vcombine.low %v4777_v61, %v4796_v46  ;;  %v5045_v36 = vcombine.low %v4819_v60, %v4826_v7  ;;  %v5064_v61 = vld [vmem:[%s4440_s27 + $0xc4] sm:$0xf] }
  0x74   : > { %3767 = vmatmul.mubr.msk.bf16.vlgmr.msra.gmra.mrb[0].mxu1 %vm715_vm3, %v4493_v38  ;;  %3919 = vmatmul.mubr.msk.bf16.gmra.mrb[16].mxu0 %vm715_vm3, %v4976_v20  ;;  %v5049_v45 = vcombine.low %v4849_v25, %v4858_v32  ;;  %v5053_v56 = vcombine.low %v4529_v14, %v4541_v28  ;;  %v5055_v31 = vcombine.low %v1334_v58, %v1337_v42  ;;  %v3365_v16 = vrot.slane %v4884_v17, 9  ;;  %v5562_v42 = vld [vmem:[#allocation5_spill] sm:$0xff] }
  0x75   : > { %3799 = vmatpush3.bf16.msra.mxu1 %v1451_v21  ;;  %3770 = vmatprep.mubr.msk.bf16.mxu1 %vm715_vm3, %v4982_v47  ;;  %v5059_v29 = vcombine.low %v4884_v17, %v4896_v53  ;;  %v1349_v7 = vrot.slane %v1347_v19, 4  ;;  %v1350_v60 = vrot.slane %v4902_v44, 5  ;;  %v1341_v14 = vsel %vm4668_vm7, %v3364_v40, %v1340_v51  ;;  %v5084_v17 = vld [vmem:[%s4440_s27 + $0xc0] sm:$0xf] }
  0x76   : > { %3922 = vmatprep.mubr.msk.bf16.mxu0 %vm715_vm3, %v4987_v0  ;;  %4297 = vmatprep.subr.msk.bf16.mxu1 %vm764_vm0, %v4994_v3  ;;  %v1344_v28 = vsel %vm4668_vm7, %v1342_v15, %v1343_v27  ;;  %v2083_v25 = vrot.slane %v5064_v61, 5  ;;  %v1348_v46 = vsel %vm4668_vm7, %v3365_v16, %v1347_v19  ;;  %v5089_v53 = vcombine.low %v4556_v48, %v4564_v52 }
  0x77   : > { %v1351_v32 = vsel %vm4668_vm7, %v1349_v7, %v1350_v60  ;;  %v5091_v44 = vcombine.low %v1341_v14, %v1344_v28  ;;  %v5095_v8 = vcombine.low %v4581_v13, %v4588_v24  ;;  %v1853_v43 = vshrl.u32 %v5084_v17, 16  ;;  %v3491_v60 = vld [vmem:[%s5503_s1 + $0x10] sm:$0x3]  ;;  %v4347_v14 = vld [vmem:[%s4440_s27 + $0x4] sm:$0xf] }
  0x78   : > { %v1856_v55 = vshll.u32 %v5084_v17, 16  ;;  %v1862_v12 = vshll.u32 %v5064_v61, 16  ;;  %v1866_v59 = vshrl.u32 %v5064_v61, 16  ;;  %v5101_v1 = vcombine.low %v1348_v46, %v1351_v32  ;;  %v4349_v32 = vld [vmem:[%s4440_s27] sm:$0xf] }
  0x79   : > { %v3435_v35 = vrot.slane %v5084_v17, 9  ;;  %v2085_v48 = vrot.slane %v2083_v25, 4  ;;  %v2086_v52 = vrot.slane %v273_v18, 5  ;;  %v1855_v2 = vrot.slane %v1853_v43, 4 }
  0x7a   : > { %v1858_v4 = vrot.slane %v1856_v55, 5  ;;  %v1864_v11 = vrot.slane %v1862_v12, 5  ;;  %v1868_v21 = vrot.slane %v1866_v59, 4  ;;  %v1872_v9 = vshll.u32 %v273_v18, 16 }
  0x7b   : > { %v2084_v10 = vsel %vm4668_vm7, %v3435_v35, %v2083_v25  ;;  %v2087_v51 = vsel %vm4668_vm7, %v2085_v48, %v2086_v52  ;;  %v5118_v40 = vcombine.low %v5562_v42, %v4615_v6  ;;  %v5563_v6 = vld [vmem:[#allocation15_spill] sm:$0xff]  ;;  %v1242_v28 = vrot.slane %v4347_v14, 5  ;;  %v5564_v48 = vld [vmem:[#allocation10_spill] sm:$0xff]  ;;  %v5565_v52 = vld [vmem:[#allocation12_spill] sm:$0xff] }
  0x7c   : > { %3771 = vmatmul.mubr.msk.bf16.gmra.mrb[4].mxu1 %vm715_vm3, %v5008_v23  ;;  %3923 = vmatmul.mubr.msk.bf16.gmra.mrb[20].mxu0 %vm715_vm3, %v5028_v62  ;;  %v1859_v13 = vor.u32 %v1858_v4, %v1855_v2  ;;  %v1869_v24 = vor.u32 %v1868_v21, %v1864_v11  ;;  %v1874_v58 = vrot.slane %v1872_v9, 5  ;;  %v5120_v19 = vcombine.low %v2084_v10, %v2087_v51  ;;  %v4348_v25 = vld [vmem:[%s4440_s27 + $0x8] sm:$0x1]  ;;  %v5567_v4 = vld [vmem:[#allocation17_spill] sm:$0xff]  ;;  %v5568_v21 = vld [vmem:[#allocation20_spill] sm:$0xff] }
  0x7d   : > { %3774 = vmatprep.mubr.msk.bf16.mxu1 %vm715_vm3, %v5053_v56  ;;  %3926 = vmatprep.mubr.msk.bf16.mxu0 %vm715_vm3, %v5055_v31  ;;  %v2531_v7 = vsel %vm764_vm0, %v5563_v6, 0  ;;  %v1245_v46 = vrot.slane %v4348_v25, 5  ;;  %v3350_v18 = vrot.slane %v4349_v32, 9  ;;  %v1244_v43 = vrot.slane %v1242_v28, 4  ;;  %v4350_v2 = vld [vmem:[%s5503_s1 + $0x8] sm:$0x3] }
  0x7e   : > { %v1860_v33 = vrot.slane %v1859_v13, 4  ;;  %v1870_v39 = vrot.slane %v1869_v24, 4  ;;  %v1657_v35 = vsel %vm764_vm0, %v4994_v3, 0  ;;  %v5566_v3 = vld [vmem:[#allocation14_spill] sm:$0xff]  ;;  %v5215_v24 = vld [vmem:[%s4440_s27 + $0xcc] sm:$0xf] }
  0x7f   : > { %v1243_v55 = vsel %vm4668_vm7, %v3350_v18, %v1242_v28  ;;  %v1246_v12 = vsel %vm4668_vm7, %v1244_v43, %v1245_v46  ;;  %v5569_v13 = vld [vmem:[#allocation22_spill] sm:$0xff]  ;;  %v5218_v9 = vld [vmem:[%s4440_s27 + $0xd0] sm:$0xf]  ;;  %v2743_v10 = vsel %vm764_vm0, %v3491_v60, 0  ;;  %v5575_v42 = vld [vmem:[#allocation9_spill] sm:$0xff]  ;;  %v2502_v14 = vshll.u32 %v5215_v24, 16 }
  0x80   : > { %v1865_v15 = vsel %vm4487_vm4, %v1860_v33, %v1864_v11  ;;  %v1875_v27 = vsel %vm4487_vm4, %v1870_v39, %v1874_v58  ;;  %v3367_v59 = vcombine.low %v1243_v55, %v1246_v12  ;;  %v5204_v11 = vcombine.low %v5084_v17, %v5064_v61  ;;  %v5570_v17 = vld [vmem:[#allocation3_spill] sm:$0xff]  ;;  %v5571_v51 = vld [vmem:[#allocation4_spill] sm:$0xff]  ;;  %v5572_v33 = vld [vmem:[#allocation6_spill] sm:$0xff] }
  0x81   : > { %v5126_v16 = vcombine.low %v1865_v15, %v1875_v27  ;;  %v3455_v61 = vcombine.low %v5215_v24, %v5218_v9  ;;  %v5573_v39 = vld [vmem:[#allocation7_spill] sm:$0xff]  ;;  %v5574_v58 = vld [vmem:[#allocation8_spill] sm:$0xff]  ;;  %v5577_v27 = vld [vmem:[#allocation13_spill] sm:$0xff]  ;;  %v2512_v28 = vshrl.u32 %v5218_v9, 16  ;;  %v2504_v32 = vrot.slane %v2502_v14, 5 }
  0x82   : > { %v5576_v15 = vld [vmem:[#allocation11_spill] sm:$0xff]  ;;  %v5578_v6 = vld [vmem:[#allocation16_spill] sm:$0xff]  ;;  %v5580_v25 = vld [vmem:[#allocation2_spill] sm:$0xff]  ;;  %v2729_v34 = vrot.slane %v5218_v9, 5 }
  0x83   : > { %v5581_v46 = vld [vmem:[#allocation19_spill] sm:$0xff]  ;;  %v2514_v43 = vrot.slane %v2512_v28, 4  ;;  %v276_v55 = vld [vmem:[%s4440_s27 + $0xd4] sm:$0x1]  ;;  %v5582_v12 = vld [vmem:[#allocation21_spill] sm:$0xff] }
  0x84   : > { %3775 = vmatmul.mubr.msk.bf16.gmra.mrb[8].mxu1 %vm715_vm3, %v5089_v53  ;;  %3927 = vmatmul.mubr.msk.bf16.gmra.mrb[24].mxu0 %vm715_vm3, %v5091_v44 }
  0x85   : > { %3778 = vmatprep.mubr.msk.bf16.mxu1 %vm715_vm3, %v5095_v8  ;;  %3930 = vmatprep.mubr.msk.bf16.mxu0 %vm715_vm3, %v5101_v1 }
  0x8c   : > { %3779 = vmatmul.mubr.msk.bf16.gmra.mrb[12].mxu1 %vm715_vm3, %v5118_v40  ;;  %3931 = vmatmul.mubr.msk.bf16.gmra.mrb[28].mxu0 %vm715_vm3, %v5120_v19 }
  0x8d   : > { %3782 = vmatprep.mubr.msk.bf16.mxu1 %vm715_vm3, %v5014_v22  ;;  %3936 = vmatprep.mubr.msk.bf16.mxu0 %vm715_vm3, %v4982_v47 }
  0x94   : > { %3783 = vmatmul.mubr.msk.bf16.gmra.mrb[16].mxu1 %vm715_vm3, %v5024_v57  ;;  %3937 = vmatmul.mubr.msk.bf16.vlgmr.msra.gmra.mrb[0].mxu0 %vm715_vm3, %v5008_v23 }
  0x95   : > { %3969 = vmatpush3.bf16.msra.mxu0 %v2531_v7  ;;  %3786 = vmatprep.mubr.msk.bf16.mxu1 %vm715_vm3, %v5033_v5  ;;  %v5579_v7 = vld [vmem:[#allocation18_spill] sm:$0xff] }
  0x96   : > { %3940 = vmatprep.mubr.msk.bf16.mxu0 %vm715_vm3, %v5053_v56  ;;  %4303 = vmatprep.subr.msk.bf16.mxu0 %vm764_vm0, %v3491_v60  ;;  %v2499_v60 = vshrl.u32 %v5215_v24, 16 }
  0x9c   : > { %3787 = vmatmul.mubr.msk.bf16.gmra.mrb[20].mxu1 %vm715_vm3, %v5037_v49  ;;  %3941 = vmatmul.mubr.msk.bf16.gmra.mrb[4].mxu0 %vm715_vm3, %v5089_v53 }
  0x9d   : > { %3790 = vmatprep.mubr.msk.bf16.mxu1 %vm715_vm3, %v5041_v54  ;;  %3944 = vmatprep.mubr.msk.bf16.mxu0 %vm715_vm3, %v5095_v8 }
  0xa4   : > { %3791 = vmatmul.mubr.msk.bf16.gmra.mrb[24].mxu1 %vm715_vm3, %v5045_v36  ;;  %3945 = vmatmul.mubr.msk.bf16.gmra.mrb[8].mxu0 %vm715_vm3, %v5118_v40 }
  0xa5   : > { %3794 = vmatprep.mubr.msk.bf16.mxu1 %vm715_vm3, %v5049_v45  ;;  %3948 = vmatprep.mubr.msk.bf16.mxu0 %vm715_vm3, %v5014_v22 }
  0xac   : > { %3795 = vmatmul.mubr.msk.bf16.gmra.mrb[28].mxu1 %vm715_vm3, %v5059_v29  ;;  %3949 = vmatmul.mubr.msk.bf16.gmra.mrb[12].mxu0 %vm715_vm3, %v5024_v57 }
  0xad   : > { %3800 = vmatprep.mubr.msk.bf16.mxu1 %vm715_vm3, %v3367_v59  ;;  %3952 = vmatprep.mubr.msk.bf16.mxu0 %vm715_vm3, %v5033_v5 }
  0xb4   : > { %3801 = vmatmul.mubr.msk.bf16.vlgmr.msra.gmra.mrb[0].mxu1 %vm715_vm3, %v5564_v48  ;;  %3953 = vmatmul.mubr.msk.bf16.gmra.mrb[16].mxu0 %vm715_vm3, %v5037_v49 }
  0xb5   : > { %3833 = vmatpush3.bf16.msra.mxu1 %v1657_v35  ;;  %3804 = vmatprep.mubr.msk.bf16.mxu1 %vm715_vm3, %v5565_v52  ;;  %v2518_v35 = vshll.u32 %v276_v55, 16 }
  0xb6   : > { %3956 = vmatprep.mubr.msk.bf16.mxu0 %vm715_vm3, %v5041_v54  ;;  %4299 = vmatprep.subr.msk.bf16.mxu1 %vm764_vm0, %v4350_v2 }
  0xbc   : > { %3805 = vmatmul.mubr.msk.bf16.gmra.mrb[4].mxu1 %vm715_vm3, %v5566_v3  ;;  %3957 = vmatmul.mubr.msk.bf16.gmra.mrb[20].mxu0 %vm715_vm3, %v5045_v36 }
  0xbd   : > { %3808 = vmatprep.mubr.msk.bf16.mxu1 %vm715_vm3, %v5567_v4  ;;  %3960 = vmatprep.mubr.msk.bf16.mxu0 %vm715_vm3, %v5049_v45 }
  0xc4   : > { %3809 = vmatmul.mubr.msk.bf16.gmra.mrb[8].mxu1 %vm715_vm3, %v5568_v21  ;;  %3961 = vmatmul.mubr.msk.bf16.gmra.mrb[24].mxu0 %vm715_vm3, %v5059_v29 }
  0xc5   : > { %3812 = vmatprep.mubr.msk.bf16.mxu1 %vm715_vm3, %v5569_v13  ;;  %3964 = vmatprep.mubr.msk.bf16.mxu0 %vm715_vm3, %v5204_v11 }
  0xcc   : > { %3813 = vmatmul.mubr.msk.bf16.gmra.mrb[12].mxu1 %vm715_vm3, %v4919_v37  ;;  %3965 = vmatmul.mubr.msk.bf16.gmra.mrb[28].mxu0 %vm715_vm3, %v3455_v61  ;;  %v2520_v61 = vrot.slane %v2518_v35, 5 }
  0xcd   : > { %3816 = vmatprep.mubr.msk.bf16.mxu1 %vm715_vm3, %v4950_v41  ;;  %3970 = vmatprep.mubr.msk.bf16.mxu0 %vm715_vm3, %v5570_v17 }
  0xd4   : > { %3817 = vmatmul.mubr.msk.bf16.gmra.mrb[16].mxu1 %vm715_vm3, %v4954_v50  ;;  %3971 = vmatmul.mubr.msk.bf16.vlgmr.msra.gmra.mrb[0].mxu0 %vm715_vm3, %v5571_v51 }
  0xd5   : > { %4003 = vmatpush3.bf16.msra.mxu0 %v2743_v10  ;;  %3820 = vmatprep.mubr.msk.bf16.mxu1 %vm715_vm3, %v4976_v20 }
  0xd6   : > { %3974 = vmatprep.mubr.msk.bf16.mxu0 %vm715_vm3, %v5572_v33 }
  0xdc   : > { %3821 = vmatmul.mubr.msk.bf16.gmra.mrb[20].mxu1 %vm715_vm3, %v4987_v0  ;;  %3975 = vmatmul.mubr.msk.bf16.gmra.mrb[4].mxu0 %vm715_vm3, %v5573_v39 }
  0xdd   : > { %3824 = vmatprep.mubr.msk.bf16.mxu1 %vm715_vm3, %v5028_v62  ;;  %3978 = vmatprep.mubr.msk.bf16.mxu0 %vm715_vm3, %v5574_v58 }
  0xe4   : > { %3825 = vmatmul.mubr.msk.bf16.gmra.mrb[24].mxu1 %vm715_vm3, %v5055_v31  ;;  %3979 = vmatmul.mubr.msk.bf16.gmra.mrb[8].mxu0 %vm715_vm3, %v5575_v42 }
  0xe5   : > { %3828 = vmatprep.mubr.msk.bf16.mxu1 %vm715_vm3, %v5091_v44  ;;  %3982 = vmatprep.mubr.msk.bf16.mxu0 %vm715_vm3, %v5576_v15 }
  0xec   : > { %3829 = vmatmul.mubr.msk.bf16.gmra.mrb[28].mxu1 %vm715_vm3, %v5101_v1  ;;  %3983 = vmatmul.mubr.msk.bf16.gmra.mrb[12].mxu0 %vm715_vm3, %v5577_v27 }
  0xed   : > { %3834 = vmatprep.mubr.msk.bf16.mxu1 %vm715_vm3, %v4493_v38  ;;  %3986 = vmatprep.mubr.msk.bf16.mxu0 %vm715_vm3, %v5578_v6  ;;  %v2508_v38 = vshll.u32 %v5218_v9, 16 }
  0xef   : > { %v2510_v18 = vrot.slane %v2508_v38, 5 }
  0xf1   : > { %v2515_v59 = vor.u32 %v2514_v43, %v2510_v18 }
  0xf3   : > { %v2516_v2 = vrot.slane %v2515_v59, 4 }
  0xf4   : > { %3835 = vmatmul.mubr.msk.bf16.vlgmr.msra.gmra.mrb[0].mxu1 %vm715_vm3, %v4982_v47  ;;  %3987 = vmatmul.mubr.msk.bf16.gmra.mrb[16].mxu0 %vm715_vm3, %v5579_v7  ;;  %v2501_v47 = vrot.slane %v2499_v60, 4 }
  0xf5   : > { %4037 = vmatpush3.bf16.msra.mxu1 %v5580_v25  ;;  %3838 = vmatprep.mubr.msk.bf16.mxu1 %vm715_vm3, %v5008_v23 }
  0xf6   : > { %3990 = vmatprep.mubr.msk.bf16.mxu0 %vm715_vm3, %v5581_v46  ;;  %v2505_v23 = vor.u32 %v2504_v32, %v2501_v47 }
  0xf8   : > { %v2506_v48 = vrot.slane %v2505_v23, 4 }
  0xfc   : > { %3839 = vmatmul.mubr.msk.bf16.gmra.mrb[4].mxu1 %vm715_vm3, %v5053_v56  ;;  %3991 = vmatmul.mubr.msk.bf16.gmra.mrb[20].mxu0 %vm715_vm3, %v5582_v12  ;;  %v2511_v56 = vsel %vm4487_vm4, %v2506_v48, %v2510_v18 }
  0xfd   : > { %3842 = vmatprep.mubr.msk.bf16.mxu1 %vm715_vm3, %v5089_v53  ;;  %3994 = vmatprep.mubr.msk.bf16.mxu0 %vm715_vm3, %v4921_v30  ;;  %v2521_v53 = vsel %vm4487_vm4, %v2516_v2, %v2520_v61 }
  0xfe   : > { %v3473_v17 = vcombine.low %v2511_v56, %v2521_v53 }
 0x104   : > { %3843 = vmatmul.mubr.msk.bf16.gmra.mrb[8].mxu1 %vm715_vm3, %v5095_v8  ;;  %3995 = vmatmul.mubr.msk.bf16.gmra.mrb[24].mxu0 %vm715_vm3, %v4948_v63 }
 0x105   : > { %3846 = vmatprep.mubr.msk.bf16.mxu1 %vm715_vm3, %v5118_v40  ;;  %3998 = vmatprep.mubr.msk.bf16.mxu0 %vm715_vm3, %v5126_v16 }
 0x10c   : > { %3847 = vmatmul.mubr.msk.bf16.gmra.mrb[12].mxu1 %vm715_vm3, %v5014_v22  ;;  %3999 = vmatmul.mubr.msk.bf16.gmra.mrb[28].mxu0 %vm715_vm3, %v3473_v17 }
 0x10d   : > { %3850 = vmatprep.mubr.msk.bf16.mxu1 %vm715_vm3, %v5024_v57  ;;  %4004 = vmatprep.mubr.msk.bf16.mxu0 %vm715_vm3, %v5565_v52 }
 0x114   : > { %3851 = vmatmul.mubr.msk.bf16.gmra.mrb[16].mxu1 %vm715_vm3, %v5033_v5  ;;  %4005 = vmatmul.mubr.msk.bf16.vlgmr.msra.gmra.mrb[0].mxu0 %vm715_vm3, %v5566_v3 }
 0x115   : > { %3854 = vmatprep.mubr.msk.bf16.mxu1 %vm715_vm3, %v5037_v49  ;;  %4008 = vmatprep.mubr.msk.bf16.mxu0 %vm715_vm3, %v5567_v4 }
 0x11c   : > { %3855 = vmatmul.mubr.msk.bf16.gmra.mrb[20].mxu1 %vm715_vm3, %v5041_v54  ;;  %4009 = vmatmul.mubr.msk.bf16.gmra.mrb[4].mxu0 %vm715_vm3, %v5568_v21 }
 0x11d   : > { %3858 = vmatprep.mubr.msk.bf16.mxu1 %vm715_vm3, %v5045_v36  ;;  %4012 = vmatprep.mubr.msk.bf16.mxu0 %vm715_vm3, %v5569_v13 }
 0x124   : > { %3859 = vmatmul.mubr.msk.bf16.gmra.mrb[24].mxu1 %vm715_vm3, %v5049_v45  ;;  %4013 = vmatmul.mubr.msk.bf16.gmra.mrb[8].mxu0 %vm715_vm3, %v4919_v37  ;;  %v3490_v37 = vrot.slane %v5215_v24, 9 }
 0x125   : > { %3862 = vmatprep.mubr.msk.bf16.mxu1 %vm715_vm3, %v5059_v29  ;;  %4016 = vmatprep.mubr.msk.bf16.mxu0 %vm715_vm3, %v4950_v41  ;;  %v2731_v41 = vrot.slane %v2729_v34, 4 }
 0x12c   : > { %3863 = vmatmul.mubr.msk.bf16.gmra.mrb[28].mxu1 %vm715_vm3, %v5204_v11  ;;  %4017 = vmatmul.mubr.msk.bf16.gmra.mrb[12].mxu0 %vm715_vm3, %v4954_v50  ;;  %v2732_v50 = vrot.slane %v276_v55, 5 }
 0x12d   : > { %3884 = vmatprep.mubr.msk.bf16.mxu1 %vm715_vm3, %v5577_v27  ;;  %4020 = vmatprep.mubr.msk.bf16.mxu0 %vm715_vm3, %v4976_v20  ;;  %v2730_v20 = vsel %vm4668_vm7, %v3490_v37, %v2729_v34 }
 0x134   : > { %3885 = vmatmul.mubr.msk.bf16.vlgmr.msra.gmra.mrb[16].mxu1 %vm715_vm3, %v5578_v6  ;;  %4021 = vmatmul.mubr.msk.bf16.gmra.mrb[16].mxu0 %vm715_vm3, %v4987_v0  ;;  %v2733_v0 = vsel %vm4668_vm7, %v2731_v41, %v2732_v50 }
 0x135   : > { %3888 = vmatprep.mubr.msk.bf16.mxu1 %vm715_vm3, %v5579_v7  ;;  %4024 = vmatprep.mubr.msk.bf16.mxu0 %vm715_vm3, %v5028_v62  ;;  %v3492_v22 = vcombine.low %v2730_v20, %v2733_v0 }
 0x13c   : > { %3889 = vmatmul.mubr.msk.bf16.gmra.mrb[20].mxu1 %vm715_vm3, %v5581_v46  ;;  %4025 = vmatmul.mubr.msk.bf16.gmra.mrb[20].mxu0 %vm715_vm3, %v5055_v31 }
 0x13d   : > { %3892 = vmatprep.mubr.msk.bf16.mxu1 %vm715_vm3, %v5582_v12  ;;  %4028 = vmatprep.mubr.msk.bf16.mxu0 %vm715_vm3, %v5091_v44 }
 0x144   : > { %3893 = vmatmul.mubr.msk.bf16.gmra.mrb[24].mxu1 %vm715_vm3, %v4921_v30  ;;  %4029 = vmatmul.mubr.msk.bf16.gmra.mrb[24].mxu0 %vm715_vm3, %v5101_v1 }
 0x145   : > { %3896 = vmatprep.mubr.msk.bf16.mxu1 %vm715_vm3, %v4948_v63  ;;  %4032 = vmatprep.mubr.msk.bf16.mxu0 %vm715_vm3, %v5120_v19 }
 0x14c   : > { %3897 = vmatmul.mubr.msk.bf16.gmra.mrb[28].mxu1 %vm715_vm3, %v5126_v16  ;;  %4033 = vmatmul.mubr.msk.bf16.gmra.mrb[28].mxu0 %vm715_vm3, %v3492_v22  ;;  %v5383_v16 = vld [vmem:[%s5504_s2] ss:$0 sm:$0xff] }
 0x1c7   : > { %v3836_v30 = vpop.f32.mrb[0].mxu1 }
 0x1c8   : > { %v1693_v57 = vpop.f32.mrb[1].mxu1 }
 0x1c9   : > { %v3837_v62 = vpop.f32.mrb[2].mxu1 }
 0x1ca   : > { %v1696_v5 = vpop.f32.mrb[3].mxu1 }
 0x1cf   : > { %v3840_v63 = vpop.f32.mrb[4].mxu1 }
 0x1d0   : > { %v1709_v49 = vpop.f32.mrb[5].mxu1 }
 0x1d1   : > { %v3841_v54 = vpop.f32.mrb[6].mxu1 }
 0x1d2   : > { %v1712_v36 = vpop.f32.mrb[7].mxu1 }
 0x1d7   : > { %v3844_v45 = vpop.f32.mrb[8].mxu1 }
 0x1d8   : > { %v1725_v31 = vpop.f32.mrb[9].mxu1 }
 0x1d9   : > { %v5368_v29 = vpop.f32.mrb[10].mxu1 }
 0x1da   : > { %v5370_v26 = vpop.f32.mrb[11].mxu1 }
 0x1df   : > { %v5372_v44 = vpop.f32.mrb[12].mxu1 }
 0x1e0   : > { %v5374_v8 = vpop.f32.mrb[13].mxu1 }
 0x1e1   : > { %v5376_v1 = vpop.f32.mrb[14].mxu1 }
 0x1e2   : > { %v5378_v40 = vpop.f32.mrb[15].mxu1 }
 0x1e7   : > { %v4006_v19 = vpop.f32.mrb[0].mxu0 }
 0x1e8   : > { %v4038_v52 = vadd.f32 %v4006_v19, %v3836_v30  ;;  %v2779_v3 = vpop.f32.mrb[1].mxu0 }
 0x1e9   : > { %v4039_v4 = vadd.f32 %v2779_v3, %v1693_v57  ;;  %v4007_v11 = vpop.f32.mrb[2].mxu0 }
 0x1ea   : > { %v2947_v21 = vadd.f32 %v4038_v52, %v5383_v16  ;;  %v4040_v13 = vadd.f32 %v4007_v11, %v3837_v62  ;;  %v2782_v24 = vpop.f32.mrb[3].mxu0 }
 0x1eb   : > { %v2945_v9 = vadd.f32 %v4039_v4, %v5383_v16  ;;  %v4041_v10 = vadd.f32 %v2782_v24, %v1696_v5 }
 0x1ec   : > { %v2979_v51 = vmax.f32 %v2947_v21, 0.0  ;;  %v2948_v33 = vadd.f32 %v4040_v13, %v5383_v16 }
 0x1ed   : > { %v2977_v39 = vmax.f32 %v2945_v9, 0.0  ;;  %v2946_v58 = vadd.f32 %v4041_v10, %v5383_v16 }
 0x1ee   : > { %v3547_v42 = vpack.c.bf16 %v2979_v51, %v2979_v51  ;;  %v2980_v15 = vmax.f32 %v2948_v33, 0.0 }
 0x1ef   : > { %v3545_v27 = vpack.c.bf16 %v2977_v39, %v2977_v39  ;;  %v2978_v6 = vmax.f32 %v2946_v58, 0.0  ;;  %v4010_v7 = vpop.f32.mrb[4].mxu0 }
 0x1f0   : > { %3140 = vst.msk [vmem:[%s5392_s22 + $0x8] sm:$0xf] %vm3137_vm8, %v3547_v42  ;;  %v3548_v60 = vpack.c.bf16 %v2980_v15, %v2980_v15  ;;  %v4042_v14 = vadd.f32 %v4010_v7, %v3840_v63  ;;  %v2795_v28 = vpop.f32.mrb[5].mxu0 }
 0x1f1   : > { %3138 = vst.msk [vmem:[%s5392_s22] sm:$0xf] %vm3137_vm8, %v3545_v27  ;;  %v3546_v25 = vpack.c.bf16 %v2978_v6, %v2978_v6  ;;  %v4043_v38 = vadd.f32 %v2795_v28, %v1709_v49  ;;  %v4011_v46 = vpop.f32.mrb[6].mxu0 }
 0x1f2   : > { %3141 = vst.msk [vmem:[%s5392_s22 + $0xc] sm:$0xf] %vm3137_vm8, %v3548_v60  ;;  %v2951_v47 = vadd.f32 %v4042_v14, %v5383_v16  ;;  %v4044_v32 = vadd.f32 %v4011_v46, %v3841_v54  ;;  %v2798_v18 = vpop.f32.mrb[7].mxu0 }
 0x1f3   : > { %3139 = vst.msk [vmem:[%s5392_s22 + $0x4] sm:$0xf] %vm3137_vm8, %v3546_v25  ;;  %v2949_v43 = vadd.f32 %v4043_v38, %v5383_v16  ;;  %v4045_v55 = vadd.f32 %v2798_v18, %v1712_v36 }
 0x1f4   : > { %v2983_v12 = vmax.f32 %v2951_v47, 0.0  ;;  %v2952_v23 = vadd.f32 %v4044_v32, %v5383_v16 }
 0x1f5   : > { %v2981_v59 = vmax.f32 %v2949_v43, 0.0  ;;  %v2950_v35 = vadd.f32 %v4045_v55, %v5383_v16 }
 0x1f6   : > { %v3551_v48 = vpack.c.bf16 %v2983_v12, %v2983_v12  ;;  %v2984_v2 = vmax.f32 %v2952_v23, 0.0 }
 0x1f7   : > { %v3549_v61 = vpack.c.bf16 %v2981_v59, %v2981_v59  ;;  %v2982_v56 = vmax.f32 %v2950_v35, 0.0  ;;  %v4014_v53 = vpop.f32.mrb[8].mxu0 }
 0x1f8   : > { %3144 = vst.msk [vmem:[%s5392_s22 + $0x18] sm:$0xf] %vm3137_vm8, %v3551_v48  ;;  %v3552_v17 = vpack.c.bf16 %v2984_v2, %v2984_v2  ;;  %v4046_v34 = vadd.f32 %v4014_v53, %v3844_v45  ;;  %v2811_v37 = vpop.f32.mrb[9].mxu0 }
 0x1f9   : > { %3142 = vst.msk [vmem:[%s5392_s22 + $0x10] sm:$0xf] %vm3137_vm8, %v3549_v61  ;;  %v3550_v41 = vpack.c.bf16 %v2982_v56, %v2982_v56  ;;  %v4047_v50 = vadd.f32 %v2811_v37, %v1725_v31  ;;  %v4015_v20 = vpop.f32.mrb[10].mxu0 }
 0x1fa   : > { %3145 = vst.msk [vmem:[%s5392_s22 + $0x1c] sm:$0xf] %vm3137_vm8, %v3552_v17  ;;  %v2955_v0 = vadd.f32 %v4046_v34, %v5383_v16  ;;  %v4048_v22 = vadd.f32 %v4015_v20, %v5368_v29  ;;  %v2814_v30 = vpop.f32.mrb[11].mxu0 }
 0x1fb   : > { %3143 = vst.msk [vmem:[%s5392_s22 + $0x14] sm:$0xf] %vm3137_vm8, %v3550_v41  ;;  %v2953_v57 = vadd.f32 %v4047_v50, %v5383_v16  ;;  %v4049_v62 = vadd.f32 %v2814_v30, %v5370_v26 }
 0x1fc   : > { %v2987_v5 = vmax.f32 %v2955_v0, 0.0  ;;  %v2956_v63 = vadd.f32 %v4048_v22, %v5383_v16 }
 0x1fd   : > { %v2985_v49 = vmax.f32 %v2953_v57, 0.0  ;;  %v2954_v54 = vadd.f32 %v4049_v62, %v5383_v16 }
 0x1fe   : > { %v3555_v36 = vpack.c.bf16 %v2987_v5, %v2987_v5  ;;  %v2988_v45 = vmax.f32 %v2956_v63, 0.0 }
 0x1ff   : > { %v3553_v31 = vpack.c.bf16 %v2985_v49, %v2985_v49  ;;  %v2986_v29 = vmax.f32 %v2954_v54, 0.0  ;;  %v4018_v19 = vpop.f32.mrb[12].mxu0 }
 0x200   : > { %3148 = vst.msk [vmem:[%s5392_s22 + $0x28] sm:$0xf] %vm3137_vm8, %v3555_v36  ;;  %v3556_v52 = vpack.c.bf16 %v2988_v45, %v2988_v45  ;;  %v4050_v3 = vadd.f32 %v4018_v19, %v5372_v44  ;;  %v2827_v4 = vpop.f32.mrb[13].mxu0 }
 0x201   : > { %3146 = vst.msk [vmem:[%s5392_s22 + $0x20] sm:$0xf] %vm3137_vm8, %v3553_v31  ;;  %v3554_v26 = vpack.c.bf16 %v2986_v29, %v2986_v29  ;;  %v4051_v11 = vadd.f32 %v2827_v4, %v5374_v8  ;;  %v4019_v21 = vpop.f32.mrb[14].mxu0 }
 0x202   : > { %3149 = vst.msk [vmem:[%s5392_s22 + $0x2c] sm:$0xf] %vm3137_vm8, %v3556_v52  ;;  %v2959_v13 = vadd.f32 %v4050_v3, %v5383_v16  ;;  %v4052_v24 = vadd.f32 %v4019_v21, %v5376_v1  ;;  %v2830_v9 = vpop.f32.mrb[15].mxu0 }
 0x203   : > { %3147 = vst.msk [vmem:[%s5392_s22 + $0x24] sm:$0xf] %vm3137_vm8, %v3554_v26  ;;  %v2957_v10 = vadd.f32 %v4051_v11, %v5383_v16  ;;  %v4053_v44 = vadd.f32 %v2830_v9, %v5378_v40 }
 0x204   : > { %v2991_v51 = vmax.f32 %v2959_v13, 0.0  ;;  %v2960_v33 = vadd.f32 %v4052_v24, %v5383_v16 }
 0x205   : > { %v2989_v8 = vmax.f32 %v2957_v10, 0.0  ;;  %v2958_v39 = vadd.f32 %v4053_v44, %v5383_v16 }
 0x206   : > { %v3559_v58 = vpack.c.bf16 %v2991_v51, %v2991_v51  ;;  %v2992_v42 = vmax.f32 %v2960_v33, 0.0 }
 0x207   : > { %v3557_v15 = vpack.c.bf16 %v2989_v8, %v2989_v8  ;;  %v2990_v27 = vmax.f32 %v2958_v39, 0.0  ;;  %v3886_v1 = vpop.f32.mrb[16].mxu1  ;;  %v4022_v6 = vpop.f32.mrb[16].mxu0 }
 0x208   : > { %3152 = vst.msk [vmem:[%s5392_s22 + $0x38] sm:$0xf] %vm3137_vm8, %v3559_v58  ;;  %v3560_v7 = vpack.c.bf16 %v2992_v42, %v2992_v42  ;;  %v4054_v60 = vadd.f32 %v4022_v6, %v3886_v1  ;;  %v1985_v40 = vpop.f32.mrb[17].mxu1  ;;  %v2843_v14 = vpop.f32.mrb[17].mxu0 }
 0x209   : > { %3150 = vst.msk [vmem:[%s5392_s22 + $0x30] sm:$0xf] %vm3137_vm8, %v3557_v15  ;;  %v3558_v28 = vpack.c.bf16 %v2990_v27, %v2990_v27  ;;  %v4055_v25 = vadd.f32 %v2843_v14, %v1985_v40  ;;  %v3887_v38 = vpop.f32.mrb[18].mxu1  ;;  %v4023_v46 = vpop.f32.mrb[18].mxu0 }
 0x20a   : > { %3153 = vst.msk [vmem:[%s5392_s22 + $0x3c] sm:$0xf] %vm3137_vm8, %v3560_v7  ;;  %v2963_v47 = vadd.f32 %v4054_v60, %v5383_v16  ;;  %v4056_v32 = vadd.f32 %v4023_v46, %v3887_v38  ;;  %v1988_v18 = vpop.f32.mrb[19].mxu1  ;;  %v2846_v43 = vpop.f32.mrb[19].mxu0 }
 0x20b   : > { %3151 = vst.msk [vmem:[%s5392_s22 + $0x34] sm:$0xf] %vm3137_vm8, %v3558_v28  ;;  %v2961_v55 = vadd.f32 %v4055_v25, %v5383_v16  ;;  %v4057_v12 = vadd.f32 %v2846_v43, %v1988_v18 }
 0x20c   : > { %v2995_v23 = vmax.f32 %v2963_v47, 0.0  ;;  %v2964_v59 = vadd.f32 %v4056_v32, %v5383_v16 }
 0x20d   : > { %v2993_v35 = vmax.f32 %v2961_v55, 0.0  ;;  %v2962_v48 = vadd.f32 %v4057_v12, %v5383_v16 }
 0x20e   : > { %v3563_v2 = vpack.c.bf16 %v2995_v23, %v2995_v23  ;;  %v2996_v61 = vmax.f32 %v2964_v59, 0.0 }
 0x20f   : > { %v3561_v56 = vpack.c.bf16 %v2993_v35, %v2993_v35  ;;  %v2994_v53 = vmax.f32 %v2962_v48, 0.0  ;;  %v3890_v17 = vpop.f32.mrb[20].mxu1  ;;  %v4026_v34 = vpop.f32.mrb[20].mxu0 }
 0x210   : > { %3156 = vst.msk [vmem:[%s5392_s22 + $0x48] sm:$0xf] %vm3137_vm8, %v3563_v2  ;;  %v3564_v37 = vpack.c.bf16 %v2996_v61, %v2996_v61  ;;  %v4058_v41 = vadd.f32 %v4026_v34, %v3890_v17  ;;  %v2001_v50 = vpop.f32.mrb[21].mxu1  ;;  %v2859_v20 = vpop.f32.mrb[21].mxu0 }
 0x211   : > { %3154 = vst.msk [vmem:[%s5392_s22 + $0x40] sm:$0xf] %vm3137_vm8, %v3561_v56  ;;  %v3562_v0 = vpack.c.bf16 %v2994_v53, %v2994_v53  ;;  %v4059_v22 = vadd.f32 %v2859_v20, %v2001_v50  ;;  %v3891_v30 = vpop.f32.mrb[22].mxu1  ;;  %v4027_v57 = vpop.f32.mrb[22].mxu0 }
 0x212   : > { %3157 = vst.msk [vmem:[%s5392_s22 + $0x4c] sm:$0xf] %vm3137_vm8, %v3564_v37  ;;  %v2967_v62 = vadd.f32 %v4058_v41, %v5383_v16  ;;  %v4060_v5 = vadd.f32 %v4027_v57, %v3891_v30  ;;  %v2004_v63 = vpop.f32.mrb[23].mxu1  ;;  %v2862_v49 = vpop.f32.mrb[23].mxu0 }
 0x213   : > { %3155 = vst.msk [vmem:[%s5392_s22 + $0x44] sm:$0xf] %vm3137_vm8, %v3562_v0  ;;  %v2965_v54 = vadd.f32 %v4059_v22, %v5383_v16  ;;  %v4061_v36 = vadd.f32 %v2862_v49, %v2004_v63 }
 0x214   : > { %v2999_v45 = vmax.f32 %v2967_v62, 0.0  ;;  %v2968_v31 = vadd.f32 %v4060_v5, %v5383_v16 }
 0x215   : > { %v2997_v29 = vmax.f32 %v2965_v54, 0.0  ;;  %v2966_v19 = vadd.f32 %v4061_v36, %v5383_v16 }
 0x216   : > { %v3567_v52 = vpack.c.bf16 %v2999_v45, %v2999_v45  ;;  %v3000_v3 = vmax.f32 %v2968_v31, 0.0 }
 0x217   : > { %v3565_v4 = vpack.c.bf16 %v2997_v29, %v2997_v29  ;;  %v2998_v26 = vmax.f32 %v2966_v19, 0.0  ;;  %v3894_v11 = vpop.f32.mrb[24].mxu1  ;;  %v4030_v21 = vpop.f32.mrb[24].mxu0 }
 0x218   : > { %3160 = vst.msk [vmem:[%s5392_s22 + $0x58] sm:$0xf] %vm3137_vm8, %v3567_v52  ;;  %v3568_v13 = vpack.c.bf16 %v3000_v3, %v3000_v3  ;;  %v4062_v24 = vadd.f32 %v4030_v21, %v3894_v11  ;;  %v2017_v9 = vpop.f32.mrb[25].mxu1  ;;  %v2875_v10 = vpop.f32.mrb[25].mxu0 }
 0x219   : > { %3158 = vst.msk [vmem:[%s5392_s22 + $0x50] sm:$0xf] %vm3137_vm8, %v3565_v4  ;;  %v3566_v44 = vpack.c.bf16 %v2998_v26, %v2998_v26  ;;  %v4063_v51 = vadd.f32 %v2875_v10, %v2017_v9  ;;  %v3895_v33 = vpop.f32.mrb[26].mxu1  ;;  %v4031_v8 = vpop.f32.mrb[26].mxu0 }
 0x21a   : > { %3161 = vst.msk [vmem:[%s5392_s22 + $0x5c] sm:$0xf] %vm3137_vm8, %v3568_v13  ;;  %v2971_v39 = vadd.f32 %v4062_v24, %v5383_v16  ;;  %v4064_v58 = vadd.f32 %v4031_v8, %v3895_v33  ;;  %v2020_v42 = vpop.f32.mrb[27].mxu1  ;;  %v2878_v15 = vpop.f32.mrb[27].mxu0 }
 0x21b   : > { %3159 = vst.msk [vmem:[%s5392_s22 + $0x54] sm:$0xf] %vm3137_vm8, %v3566_v44  ;;  %v2969_v27 = vadd.f32 %v4063_v51, %v5383_v16  ;;  %v4065_v1 = vadd.f32 %v2878_v15, %v2020_v42 }
 0x21c   : > { %v3003_v6 = vmax.f32 %v2971_v39, 0.0  ;;  %v2972_v7 = vadd.f32 %v4064_v58, %v5383_v16 }
 0x21d   : > { %v3001_v60 = vmax.f32 %v2969_v27, 0.0  ;;  %v2970_v40 = vadd.f32 %v4065_v1, %v5383_v16 }
 0x21e   : > { %v3571_v14 = vpack.c.bf16 %v3003_v6, %v3003_v6  ;;  %v3004_v28 = vmax.f32 %v2972_v7, 0.0 }
 0x21f   : > { %v3569_v25 = vpack.c.bf16 %v3001_v60, %v3001_v60  ;;  %v3002_v38 = vmax.f32 %v2970_v40, 0.0  ;;  %v3898_v46 = vpop.f32.mrb[28].mxu1  ;;  %v4034_v47 = vpop.f32.mrb[28].mxu0 }
 0x220   : > { %3164 = vst.msk [vmem:[%s5392_s22 + $0x68] sm:$0xf] %vm3137_vm8, %v3571_v14  ;;  %v3572_v32 = vpack.c.bf16 %v3004_v28, %v3004_v28  ;;  %v4066_v18 = vadd.f32 %v4034_v47, %v3898_v46  ;;  %v2033_v43 = vpop.f32.mrb[29].mxu1  ;;  %v2891_v55 = vpop.f32.mrb[29].mxu0 }
 0x221   : > { %3162 = vst.msk [vmem:[%s5392_s22 + $0x60] sm:$0xf] %vm3137_vm8, %v3569_v25  ;;  %v3570_v12 = vpack.c.bf16 %v3002_v38, %v3002_v38  ;;  %v4067_v23 = vadd.f32 %v2891_v55, %v2033_v43  ;;  %v3899_v59 = vpop.f32.mrb[30].mxu1  ;;  %v4035_v35 = vpop.f32.mrb[30].mxu0 }
 0x222   : > { %3165 = vst.msk [vmem:[%s5392_s22 + $0x6c] sm:$0xf] %vm3137_vm8, %v3572_v32  ;;  %v2975_v48 = vadd.f32 %v4066_v18, %v5383_v16  ;;  %v4068_v2 = vadd.f32 %v4035_v35, %v3899_v59  ;;  %v2036_v61 = vpop.f32.mrb[31].mxu1  ;;  %v2894_v56 = vpop.f32.mrb[31].mxu0 }
 0x223   : > { %3163 = vst.msk [vmem:[%s5392_s22 + $0x64] sm:$0xf] %vm3137_vm8, %v3570_v12  ;;  %v2973_v53 = vadd.f32 %v4067_v23, %v5383_v16  ;;  %v4069_v17 = vadd.f32 %v2894_v56, %v2036_v61 }
 0x224   : > { %v3007_v34 = vmax.f32 %v2975_v48, 0.0  ;;  %v2976_v37 = vadd.f32 %v4068_v2, %v5383_v16 }
 0x225   : > { %v3005_v41 = vmax.f32 %v2973_v53, 0.0  ;;  %v2974_v50 = vadd.f32 %v4069_v17, %v5383_v16 }
 0x226   : > { %v3575_v20 = vpack.c.bf16 %v3007_v34, %v3007_v34  ;;  %v3008_v0 = vmax.f32 %v2976_v37, 0.0 }
 0x227   : > { %v3573_v22 = vpack.c.bf16 %v3005_v41, %v3005_v41  ;;  %v3006_v30 = vmax.f32 %v2974_v50, 0.0 }
 0x228   : > { %3168 = vst.msk [vmem:[%s5392_s22 + $0x78] sm:$0xf] %vm3137_vm8, %v3575_v20  ;;  %v3576_v57 = vpack.c.bf16 %v3008_v0, %v3008_v0 }
 0x229   : > { %3166 = vst.msk [vmem:[%s5392_s22 + $0x70] sm:$0xf] %vm3137_vm8, %v3573_v22  ;;  %v3574_v62 = vpack.c.bf16 %v3006_v30, %v3006_v30 }
 0x22a   : > { %3169 = vst.msk [vmem:[%s5392_s22 + $0x7c] sm:$0xf] %vm3137_vm8, %v3576_v57 }
 0x22b   : > { %3167 = vst.msk [vmem:[%s5392_s22 + $0x74] sm:$0xf] %vm3137_vm8, %v3574_v62 }
 0x22c PF: > { %s13_s14 = sadd.s32 1, %s4373_s14   ;;  %s5583_s12 = smov %s4369_s13 }
 0x22d   : > { %p10_p5 = scmp.ge.s32.totalorder %s13_s14, 4   ;;  %s5584_s13 = smov %s5586_s15 }
 0x22f   :  { %12 = sbr.rel (!%p10_p5) target bundleno = 2 (0x2), region = 76 }

</bundles_post_ra>
